<compile_context>
chip_gen: v6e
topology: v6e:2x2x1
jax: 0.10.0
libtpu: 0.0.40
codegen_flags: <defaults>
</compile_context>

<pallas_src>
import jax
import jax.numpy as jnp
from jax import lax
from jax.experimental import pallas as pl
from jax.experimental.pallas import tpu as pltpu


def bottleneck_kernel(x_ref, xt_ref, xb_ref, w1_ref, w2_ref, w3_ref,
                      b1_ref, b2_ref, b3_ref, o_ref, acc_ref):
    # x_ref: (1, TR*W, Cin) f32 main row tile; xt_ref/xb_ref: (1, W, Cin) f32
    # one-row halos above/below (clamped at the image border, zeroed here).
    _, TRW, _ = x_ref.shape
    W = xt_ref.shape[1]
    RW = TRW + 2 * W                       # rows incl. halo
    f32, bf16 = jnp.float32, jnp.bfloat16

    r = pl.program_id(1)
    last = pl.num_programs(1) - 1

    # ---- conv_1: 1x1 (BN scale folded) + bias + ReLU over main + halo rows --
    x_slab = jnp.concatenate(
        [xt_ref[0].astype(bf16), x_ref[0].astype(bf16), xb_ref[0].astype(bf16)],
        axis=0)                                            # (RW, Cin) bf16
    h1 = jnp.dot(x_slab, w1_ref[...], preferred_element_type=f32)
    h1 = jnp.maximum(h1 + b1_ref[...], 0.0)                # (RW, Cw) f32

    # Halo rows outside the image act as the 3x3 conv's zero rows.
    ridx = lax.broadcasted_iota(jnp.int32, (RW, 1), 0)
    outside = ((ridx < W) & (r == 0)) | ((ridx >= W + TRW) & (r == last))
    h1 = jnp.where(outside, 0.0, h1)

    # ---- conv_2: 3x3, stride 1, pad 1, as three fused K = 3*Cw dots ---------
    # Left/right column taps: shift the flat row slab by +/-1 and zero the
    # positions that wrap across an image-row boundary (the conv's W padding).
    col = ridx % W
    left = jnp.where(col == 0, 0.0, jnp.roll(h1, 1, axis=0))
    right = jnp.where(col == W - 1, 0.0, jnp.roll(h1, -1, axis=0))
    b_op = jnp.concatenate(
        [left.astype(bf16), h1.astype(bf16), right.astype(bf16)], axis=-1)

    # Three ki taps = aligned row-offset slices (0, W, 2W); accumulate in place.
    acc_ref[...] = jnp.dot(b_op[0:TRW], w2_ref[0],
                           preferred_element_type=f32)
    acc_ref[...] += jnp.dot(b_op[W:W + TRW], w2_ref[1],
                            preferred_element_type=f32)
    acc_ref[...] += jnp.dot(b_op[2 * W:2 * W + TRW], w2_ref[2],
                            preferred_element_type=f32)
    h2 = jnp.maximum(acc_ref[...] + b2_ref[...], 0.0).astype(bf16)

    # ---- conv_3: 1x1 (BN scale folded) + bias, identity shortcut, ReLU ------
    h3 = jnp.dot(h2, w3_ref[...], preferred_element_type=f32) + b3_ref[...]
    out = jnp.maximum(h3 + x_ref[0].astype(f32), 0.0)
    o_ref[0] = out.astype(o_ref.dtype)


def _rup128(c):
    return ((c + 127) // 128) * 128


def _pad_axis(a, axis, target):
    if a.shape[axis] == target:
        return a
    widths = [(0, 0)] * a.ndim
    widths[axis] = (0, target - a.shape[axis])
    return jnp.pad(a, widths)


def _pick_tr(h):
    for t in (16, 14, 12, 10, 8, 7, 6, 5, 4, 3, 2):
        if t <= h and h % t == 0:
            return t
    return h


def bottleneck_block(x, w1, w2, w3, s1, b1, s2, b2, s3, b3, *, tr=None):
    """x: (N, H, W, Cin) f32 NHWC.  w1: (Cin, Cw), w2: (3, 3, Cw, Cw) HWIO,
    w3: (Cw, Cout).  s*/b*: folded BN scale/bias, shape (1, C).  Output bf16."""
    N, H, W, Cin = x.shape
    Cw = w1.shape[1]
    Cout = w3.shape[1]
    assert Cin == Cout, "identity shortcut requires input_dim == hidden_dim * 4"
    assert W % 8 == 0, "W must be a multiple of 8 (see TODO for 28/14/7 stages)"
    if tr is None:
        tr = _pick_tr(H)
    assert H % tr == 0, "row tile must divide H"
    nr = H // tr

    Cinp, Cwp, Coutp = _rup128(Cin), _rup128(Cw), _rup128(Cout)
    bf16, f32 = jnp.bfloat16, jnp.float32

    # x stays f32 (cast to bf16 inside the kernel, f32 read reused for the
    # residual); channel padding only when Cin is not already a lane multiple.
    xr = _pad_axis(x, 3, Cinp).reshape(N, H * W, Cinp)

    # Fold BN scales into the conv weights, pad channel dims, cast to bf16.
    w1p = _pad_axis(_pad_axis(w1 * s1, 0, Cinp), 1, Cwp).astype(bf16)
    w2s = w2 * s2.reshape(1, 1, 1, -1)
    w2p = _pad_axis(_pad_axis(w2s, 2, Cwp), 3, Cwp).astype(bf16)
    w2r = w2p.reshape(3, 3 * Cwp, Cwp)            # (ki, kj*Cwp + ci, co)
    w3p = _pad_axis(_pad_axis(w3 * s3, 0, Cwp), 1, Coutp).astype(bf16)
    b1p = _pad_axis(b1, 1, Cwp).astype(f32)
    b2p = _pad_axis(b2, 1, Cwp).astype(f32)
    b3p = _pad_axis(b3, 1, Coutp).astype(f32)

    trw = tr * W
    full2d = lambda n, r: (0, 0)

    out = pl.pallas_call(
        bottleneck_kernel,
        out_shape=jax.ShapeDtypeStruct((N, H * W, Coutp), bf16),
        grid_spec=pltpu.PrefetchScalarGridSpec(
            num_scalar_prefetch=0,
            grid=(N, nr),
            in_specs=[
                # main row tile
                pl.BlockSpec((1, trw, Cinp), lambda n, r: (n, r, 0)),
                # 1-row halos above / below (clamped at the image border;
                # the kernel zeroes them there)
                pl.BlockSpec((1, W, Cinp),
                             lambda n, r: (n, jnp.maximum(r * tr - 1, 0), 0)),
                pl.BlockSpec((1, W, Cinp),
                             lambda n, r: (n, jnp.minimum(r * tr + tr, H - 1), 0)),
                pl.BlockSpec((Cinp, Cwp), full2d),                      # w1
                pl.BlockSpec((3, 3 * Cwp, Cwp), lambda n, r: (0, 0, 0)),  # w2
                pl.BlockSpec((Cwp, Coutp), full2d),                     # w3
                pl.BlockSpec((1, Cwp), full2d),                         # b1
                pl.BlockSpec((1, Cwp), full2d),                         # b2
                pl.BlockSpec((1, Coutp), full2d),                       # b3
            ],
            out_specs=pl.BlockSpec((1, trw, Coutp), lambda n, r: (n, r, 0)),
            scratch_shapes=[pltpu.VMEM((trw, Cwp), f32)],
        ),
        compiler_params=pltpu.CompilerParams(
            dimension_semantics=("parallel", "parallel"),
            vmem_limit_bytes=48 * 1024 * 1024),
    )(xr, xr, xr, w1p, w2r, w3p, b1p, b2p, b3p)

    out = out.reshape(N, H, W, Coutp)
    if Coutp != Cout:
        out = out[..., :Cout]
    return out


def _fold_bn(gamma, beta, mean, var, eps=1e-5):
    scale = gamma / jnp.sqrt(var + eps)
    bias = beta - mean * scale
    return scale[None, :], bias[None, :]


def _reference(x, w1, w2, w3, s1, b1, s2, b2, s3, b3):
    """Pure-JAX reference mirroring the kernel's bf16-operand / f32-accumulate numerics."""
    bf16, f32 = jnp.bfloat16, jnp.float32
    w1f = (w1 * s1).astype(bf16)
    w2f = (w2 * s2.reshape(1, 1, 1, -1)).astype(bf16)
    w3f = (w3 * s3).astype(bf16)
    xb = x.astype(bf16)

    h = jnp.einsum('nhwc,cd->nhwd', xb, w1f, preferred_element_type=f32)
    h = jnp.maximum(h + b1.reshape(1, 1, 1, -1), 0.0).astype(bf16)
    h = lax.conv_general_dilated(h, w2f, window_strides=(1, 1),
                                 padding=((1, 1), (1, 1)),
                                 dimension_numbers=('NHWC', 'HWIO', 'NHWC'),
                                 preferred_element_type=f32)
    h = jnp.maximum(h + b2.reshape(1, 1, 1, -1), 0.0).astype(bf16)
    h = jnp.einsum('nhwc,cd->nhwd', h, w3f, preferred_element_type=f32)
    h = h + b3.reshape(1, 1, 1, -1)
    return jnp.maximum(h + x, 0.0)        # residual in f32, like the kernel


if __name__ == "__main__":
    # BottleneckBlock(input_dim=16, hidden_dim=4): channel_width = 4,
    # output channels = hidden_dim * 4 = 16 (== input_dim -> identity shortcut).
    N, H, W = 2, 16, 16
    input_dim, hidden_dim = 16, 4
    Cw = hidden_dim                 # int(hidden_dim * (64/64)) * 1
    Cout = hidden_dim * 4

    key = jax.random.PRNGKey(0)
    ks = jax.random.split(key, 8)

    x = jax.random.normal(ks[0], (N, H, W, input_dim), jnp.float32)
    w1 = jax.random.normal(ks[1], (input_dim, Cw), jnp.float32) * 0.1
    w2 = jax.random.normal(ks[2], (3, 3, Cw, Cw), jnp.float32) * 0.1
    w3 = jax.random.normal(ks[3], (Cw, Cout), jnp.float32) * 0.1

    def bn_params(k, c):
        kg, kb, km, kv = jax.random.split(k, 4)
        gamma = 1.0 + 0.1 * jax.random.normal(kg, (c,), jnp.float32)
        beta = 0.1 * jax.random.normal(kb, (c,), jnp.float32)
        mean = 0.1 * jax.random.normal(km, (c,), jnp.float32)
        var = jax.random.uniform(kv, (c,), jnp.float32, 0.5, 1.5)
        return _fold_bn(gamma, beta, mean, var)

    s1, b1 = bn_params(ks[4], Cw)
    s2, b2 = bn_params(ks[5], Cw)
    s3, b3 = bn_params(ks[6], Cout)

    fn = jax.jit(lambda *a: bottleneck_block(*a, tr=8))   # two row tiles of 8
    out = jax.block_until_ready(fn(x, w1, w2, w3, s1, b1, s2, b2, s3, b3))

    ref = _reference(x, w1, w2, w3, s1, b1, s2, b2, s3, b3)
    ref_b = ref.astype(jnp.bfloat16).astype(jnp.float32)
    outf = out.astype(jnp.float32)

    assert out.shape == (N, H, W, Cout)
    assert out.dtype == jnp.bfloat16
    max_diff = float(jnp.max(jnp.abs(outf - ref_b)))
    assert jnp.allclose(outf, ref_b, atol=2e-2, rtol=2e-2), (
        "mismatch vs reference, max abs diff = %g" % max_diff)

    print("KERNEL_OK")
</pallas_src>

<mosaic_0001>
module attributes {stable_mosaic.version = 11 : i64} {
  func.func @bottleneck_kernel(%arg0: i32, %arg1: i32, %arg2: memref<1x128x128xf32, #tpu.memory_space<vmem>>, %arg3: memref<1x16x128xf32, #tpu.memory_space<vmem>>, %arg4: memref<1x16x128xf32, #tpu.memory_space<vmem>>, %arg5: memref<128x128xbf16, #tpu.memory_space<vmem>>, %arg6: memref<3x384x128xbf16, #tpu.memory_space<vmem>>, %arg7: memref<128x128xbf16, #tpu.memory_space<vmem>>, %arg8: memref<1x128xf32, #tpu.memory_space<vmem>>, %arg9: memref<1x128xf32, #tpu.memory_space<vmem>>, %arg10: memref<1x128xf32, #tpu.memory_space<vmem>>, %arg11: memref<1x128x128xbf16, #tpu.memory_space<vmem>>, %arg12: memref<128x128xf32, #tpu.memory_space<vmem>>) attributes {dimension_semantics = [#tpu.dimension_semantics<parallel>, #tpu.dimension_semantics<parallel>], iteration_bounds = array<i64: 2, 2>, scalar_prefetch = 0 : i64, scratch_operands = 1 : i64, tpu.core_type = #tpu.core_type<tc>, window_params = [{transform_indices = @transform_0, window_bounds = array<i64: 1, 128, 128>}, {transform_indices = @transform_1, window_bounds = array<i64: 1, 16, 128>}, {transform_indices = @transform_2, window_bounds = array<i64: 1, 16, 128>}, {pipeline_mode = #tpu.pipeline_mode<synchronous>, transform_indices = @transform_3, window_bounds = array<i64: 128, 128>}, {pipeline_mode = #tpu.pipeline_mode<synchronous>, transform_indices = @transform_4, window_bounds = array<i64: 3, 384, 128>}, {pipeline_mode = #tpu.pipeline_mode<synchronous>, transform_indices = @transform_5, window_bounds = array<i64: 128, 128>}, {pipeline_mode = #tpu.pipeline_mode<synchronous>, transform_indices = @transform_6, window_bounds = array<i64: 1, 128>}, {pipeline_mode = #tpu.pipeline_mode<synchronous>, transform_indices = @transform_7, window_bounds = array<i64: 1, 128>}, {pipeline_mode = #tpu.pipeline_mode<synchronous>, transform_indices = @transform_8, window_bounds = array<i64: 1, 128>}, {transform_indices = @transform_9, window_bounds = array<i64: 1, 128, 128>}]} {
    %c0 = arith.constant 0 : index
    %c0_0 = arith.constant 0 : index
    %c0_1 = arith.constant 0 : index
    %0 = vector.load %arg3[%c0, %c0_0, %c0_1] : memref<1x16x128xf32, #tpu.memory_space<vmem>>, vector<1x16x128xf32>
    %1 = vector.shape_cast %0 : vector<1x16x128xf32> to vector<16x128xf32>
    %2 = arith.truncf %1 : vector<16x128xf32> to vector<16x128xbf16>
    %c0_2 = arith.constant 0 : index
    %c0_3 = arith.constant 0 : index
    %c0_4 = arith.constant 0 : index
    %3 = vector.load %arg2[%c0_2, %c0_3, %c0_4] : memref<1x128x128xf32, #tpu.memory_space<vmem>>, vector<1x128x128xf32>
    %4 = vector.shape_cast %3 : vector<1x128x128xf32> to vector<128x128xf32>
    %5 = arith.truncf %4 : vector<128x128xf32> to vector<128x128xbf16>
    %c0_5 = arith.constant 0 : index
    %c0_6 = arith.constant 0 : index
    %c0_7 = arith.constant 0 : index
    %6 = vector.load %arg4[%c0_5, %c0_6, %c0_7] : memref<1x16x128xf32, #tpu.memory_space<vmem>>, vector<1x16x128xf32>
    %7 = vector.shape_cast %6 : vector<1x16x128xf32> to vector<16x128xf32>
    %8 = arith.truncf %7 : vector<16x128xf32> to vector<16x128xbf16>
    %9 = tpu.concatenate %2, %5, %8 in 0 : vector<16x128xbf16>, vector<128x128xbf16>, vector<16x128xbf16> -> vector<160x128xbf16>
    %c0_8 = arith.constant 0 : index
    %c0_9 = arith.constant 0 : index
    %10 = vector.load %arg5[%c0_8, %c0_9] : memref<128x128xbf16, #tpu.memory_space<vmem>>, vector<128x128xbf16>
    %cst = arith.constant dense<0.000000e+00> : vector<160x128xf32>
    %11 = tpu.matmul %9, %10, %cst {dimension_numbers = #tpu.dot_dimension_numbers<[1], [0], [0], [1], [0, 0, 1, 1], [], []>} : vector<160x128xbf16>, vector<128x128xbf16>, vector<160x128xf32> -> vector<160x128xf32>
    %c0_10 = arith.constant 0 : index
    %c0_11 = arith.constant 0 : index
    %12 = vector.load %arg8[%c0_10, %c0_11] : memref<1x128xf32, #tpu.memory_space<vmem>>, vector<1x128xf32>
    %13 = vector.broadcast %12 : vector<1x128xf32> to vector<160x128xf32>
    %14 = arith.addf %11, %13 : vector<160x128xf32>
    %cst_12 = arith.constant 0.000000e+00 : f32
    %15 = vector.broadcast %cst_12 : f32 to vector<160x128xf32>
    %16 = arith.maximumf %14, %15 : vector<160x128xf32>
    %17 = tpu.iota {dimensions = array<i32: 0>} : vector<160x1xi32>
    %c16_i32 = arith.constant 16 : i32
    %18 = vector.broadcast %c16_i32 : i32 to vector<160x1xi32>
    %19 = arith.cmpi slt, %17, %18 : vector<160x1xi32>
    %c0_i32 = arith.constant 0 : i32
    %20 = arith.cmpi eq, %arg1, %c0_i32 : i32
    %21 = vector.broadcast %20 : i1 to vector<160x1xi1>
    %22 = arith.andi %19, %21 : vector<160x1xi1>
    %c144_i32 = arith.constant 144 : i32
    %23 = vector.broadcast %c144_i32 : i32 to vector<160x1xi32>
    %24 = arith.cmpi sge, %17, %23 : vector<160x1xi32>
    %c1_i32 = arith.constant 1 : i32
    %25 = arith.cmpi eq, %arg1, %c1_i32 : i32
    %26 = vector.broadcast %25 : i1 to vector<160x1xi1>
    %27 = arith.andi %24, %26 : vector<160x1xi1>
    %28 = arith.ori %22, %27 : vector<160x1xi1>
    %cst_13 = arith.constant 0.000000e+00 : f32
    %29 = vector.shape_cast %28 : vector<160x1xi1> to vector<160x1xi1>
    %30 = vector.broadcast %29 : vector<160x1xi1> to vector<160x128xi1>
    %31 = vector.broadcast %cst_13 : f32 to vector<160x128xf32>
    %32 = arith.select %30, %31, %16 : vector<160x128xi1>, vector<160x128xf32>
    %c16_i32_14 = arith.constant 16 : i32
    %c0_i32_15 = arith.constant 0 : i32
    %33 = arith.cmpi eq, %c16_i32_14, %c0_i32_15 : i32
    %c1_i32_16 = arith.constant 1 : i32
    %34 = arith.select %33, %c1_i32_16, %c16_i32_14 : i32
    %35 = vector.broadcast %34 : i32 to vector<160x1xi32>
    %36 = arith.remsi %17, %35 : vector<160x1xi32>
    %c0_i32_17 = arith.constant 0 : i32
    %37 = vector.broadcast %c0_i32_17 : i32 to vector<160x1xi32>
    %38 = arith.cmpi ne, %36, %37 : vector<160x1xi32>
    %c0_i32_18 = arith.constant 0 : i32
    %39 = vector.broadcast %c0_i32_18 : i32 to vector<160x1xi32>
    %40 = arith.cmpi slt, %36, %39 : vector<160x1xi32>
    %c0_i32_19 = arith.constant 0 : i32
    %41 = arith.cmpi slt, %34, %c0_i32_19 : i32
    %42 = vector.broadcast %41 : i1 to vector<160x1xi1>
    %43 = vector.broadcast %42 : vector<160x1xi1> to vector<160x1xi1>
    %44 = arith.xori %40, %43 : vector<160x1xi1>
    %45 = arith.andi %44, %38 : vector<160x1xi1>
    %46 = vector.broadcast %34 : i32 to vector<160x1xi32>
    %47 = arith.addi %36, %46 : vector<160x1xi32>
    %48 = arith.select %45, %47, %36 : vector<160x1xi1>, vector<160x1xi32>
    %c0_i32_20 = arith.constant 0 : i32
    %49 = vector.broadcast %c0_i32_20 : i32 to vector<160x1xi32>
    %50 = arith.cmpi eq, %48, %49 : vector<160x1xi32>
    %51 = vector.extract_strided_slice %32 {offsets = [159, 0], sizes = [1, 128], strides = [1, 1]} : vector<160x128xf32> to vector<1x128xf32>
    %52 = vector.extract_strided_slice %32 {offsets = [0, 0], sizes = [159, 128], strides = [1, 1]} : vector<160x128xf32> to vector<159x128xf32>
    %53 = tpu.concatenate %51, %52 in 0 : vector<1x128xf32>, vector<159x128xf32> -> vector<160x128xf32>
    %cst_21 = arith.constant 0.000000e+00 : f32
    %54 = vector.shape_cast %50 : vector<160x1xi1> to vector<160x1xi1>
    %55 = vector.broadcast %54 : vector<160x1xi1> to vector<160x128xi1>
    %56 = vector.broadcast %cst_21 : f32 to vector<160x128xf32>
    %57 = arith.select %55, %56, %53 : vector<160x128xi1>, vector<160x128xf32>
    %c15_i32 = arith.constant 15 : i32
    %58 = vector.broadcast %c15_i32 : i32 to vector<160x1xi32>
    %59 = arith.cmpi eq, %48, %58 : vector<160x1xi32>
    %60 = vector.extract_strided_slice %32 {offsets = [1, 0], sizes = [159, 128], strides = [1, 1]} : vector<160x128xf32> to vector<159x128xf32>
    %61 = vector.extract_strided_slice %32 {offsets = [0, 0], sizes = [1, 128], strides = [1, 1]} : vector<160x128xf32> to vector<1x128xf32>
    %62 = tpu.concatenate %60, %61 in 0 : vector<159x128xf32>, vector<1x128xf32> -> vector<160x128xf32>
    %cst_22 = arith.constant 0.000000e+00 : f32
    %63 = vector.shape_cast %59 : vector<160x1xi1> to vector<160x1xi1>
    %64 = vector.broadcast %63 : vector<160x1xi1> to vector<160x128xi1>
    %65 = vector.broadcast %cst_22 : f32 to vector<160x128xf32>
    %66 = arith.select %64, %65, %62 : vector<160x128xi1>, vector<160x128xf32>
    %67 = arith.truncf %57 : vector<160x128xf32> to vector<160x128xbf16>
    %68 = arith.truncf %32 : vector<160x128xf32> to vector<160x128xbf16>
    %69 = arith.truncf %66 : vector<160x128xf32> to vector<160x128xbf16>
    %70 = tpu.concatenate %67, %68, %69 in 1 : vector<160x128xbf16>, vector<160x128xbf16>, vector<160x128xbf16> -> vector<160x384xbf16>
    %71 = vector.extract_strided_slice %70 {offsets = [0, 0], sizes = [128, 384], strides = [1, 1]} : vector<160x384xbf16> to vector<128x384xbf16>
    %c0_23 = arith.constant 0 : index
    %c0_24 = arith.constant 0 : index
    %c0_25 = arith.constant 0 : index
    %72 = vector.load %arg6[%c0_23, %c0_24, %c0_25] : memref<3x384x128xbf16, #tpu.memory_space<vmem>>, vector<1x384x128xbf16>
    %73 = vector.shape_cast %72 : vector<1x384x128xbf16> to vector<384x128xbf16>
    %cst_26 = arith.constant dense<0.000000e+00> : vector<128x128xf32>
    %74 = tpu.matmul %71, %73, %cst_26 {dimension_numbers = #tpu.dot_dimension_numbers<[1], [0], [0], [1], [0, 0, 1, 1], [], []>} : vector<128x384xbf16>, vector<384x128xbf16>, vector<128x128xf32> -> vector<128x128xf32>
    %c0_27 = arith.constant 0 : index
    %c0_28 = arith.constant 0 : index
    %75 = vector.load %arg12[%c0_27, %c0_28] : memref<128x128xf32, #tpu.memory_space<vmem>>, vector<128x128xf32>
    tpu.vector_store %arg12[%c0_27, %c0_28], %74 {strides = array<i32>} : memref<128x128xf32, #tpu.memory_space<vmem>>, vector<128x128xf32>,
    %c0_29 = arith.constant 0 : index
    %c0_30 = arith.constant 0 : index
    %76 = vector.load %arg12[%c0_29, %c0_30] : memref<128x128xf32, #tpu.memory_space<vmem>>, vector<128x128xf32>
    %77 = vector.extract_strided_slice %70 {offsets = [16, 0], sizes = [128, 384], strides = [1, 1]} : vector<160x384xbf16> to vector<128x384xbf16>
    %c1 = arith.constant 1 : index
    %c0_31 = arith.constant 0 : index
    %c0_32 = arith.constant 0 : index
    %78 = vector.load %arg6[%c1, %c0_31, %c0_32] : memref<3x384x128xbf16, #tpu.memory_space<vmem>>, vector<1x384x128xbf16>
    %79 = vector.shape_cast %78 : vector<1x384x128xbf16> to vector<384x128xbf16>
    %cst_33 = arith.constant dense<0.000000e+00> : vector<128x128xf32>
    %80 = tpu.matmul %77, %79, %cst_33 {dimension_numbers = #tpu.dot_dimension_numbers<[1], [0], [0], [1], [0, 0, 1, 1], [], []>} : vector<128x384xbf16>, vector<384x128xbf16>, vector<128x128xf32> -> vector<128x128xf32>
    %81 = arith.addf %76, %80 : vector<128x128xf32>
    %c0_34 = arith.constant 0 : index
    %c0_35 = arith.constant 0 : index
    %82 = vector.load %arg12[%c0_34, %c0_35] : memref<128x128xf32, #tpu.memory_space<vmem>>, vector<128x128xf32>
    tpu.vector_store %arg12[%c0_34, %c0_35], %81 {strides = array<i32>} : memref<128x128xf32, #tpu.memory_space<vmem>>, vector<128x128xf32>,
    %c0_36 = arith.constant 0 : index
    %c0_37 = arith.constant 0 : index
    %83 = vector.load %arg12[%c0_36, %c0_37] : memref<128x128xf32, #tpu.memory_space<vmem>>, vector<128x128xf32>
    %84 = vector.extract_strided_slice %70 {offsets = [32, 0], sizes = [128, 384], strides = [1, 1]} : vector<160x384xbf16> to vector<128x384xbf16>
    %c2 = arith.constant 2 : index
    %c0_38 = arith.constant 0 : index
    %c0_39 = arith.constant 0 : index
    %85 = vector.load %arg6[%c2, %c0_38, %c0_39] : memref<3x384x128xbf16, #tpu.memory_space<vmem>>, vector<1x384x128xbf16>
    %86 = vector.shape_cast %85 : vector<1x384x128xbf16> to vector<384x128xbf16>
    %cst_40 = arith.constant dense<0.000000e+00> : vector<128x128xf32>
    %87 = tpu.matmul %84, %86, %cst_40 {dimension_numbers = #tpu.dot_dimension_numbers<[1], [0], [0], [1], [0, 0, 1, 1], [], []>} : vector<128x384xbf16>, vector<384x128xbf16>, vector<128x128xf32> -> vector<128x128xf32>
    %88 = arith.addf %83, %87 : vector<128x128xf32>
    %c0_41 = arith.constant 0 : index
    %c0_42 = arith.constant 0 : index
    %89 = vector.load %arg12[%c0_41, %c0_42] : memref<128x128xf32, #tpu.memory_space<vmem>>, vector<128x128xf32>
    tpu.vector_store %arg12[%c0_41, %c0_42], %88 {strides = array<i32>} : memref<128x128xf32, #tpu.memory_space<vmem>>, vector<128x128xf32>,
    %c0_43 = arith.constant 0 : index
    %c0_44 = arith.constant 0 : index
    %90 = vector.load %arg12[%c0_43, %c0_44] : memref<128x128xf32, #tpu.memory_space<vmem>>, vector<128x128xf32>
    %c0_45 = arith.constant 0 : index
    %c0_46 = arith.constant 0 : index
    %91 = vector.load %arg9[%c0_45, %c0_46] : memref<1x128xf32, #tpu.memory_space<vmem>>, vector<1x128xf32>
    %92 = vector.broadcast %91 : vector<1x128xf32> to vector<128x128xf32>
    %93 = arith.addf %90, %92 : vector<128x128xf32>
    %cst_47 = arith.constant 0.000000e+00 : f32
    %94 = vector.broadcast %cst_47 : f32 to vector<128x128xf32>
    %95 = arith.maximumf %93, %94 : vector<128x128xf32>
    %96 = arith.truncf %95 : vector<128x128xf32> to vector<128x128xbf16>
    %c0_48 = arith.constant 0 : index
    %c0_49 = arith.constant 0 : index
    %97 = vector.load %arg7[%c0_48, %c0_49] : memref<128x128xbf16, #tpu.memory_space<vmem>>, vector<128x128xbf16>
    %cst_50 = arith.constant dense<0.000000e+00> : vector<128x128xf32>
    %98 = tpu.matmul %96, %97, %cst_50 {dimension_numbers = #tpu.dot_dimension_numbers<[1], [0], [0], [1], [0, 0, 1, 1], [], []>} : vector<128x128xbf16>, vector<128x128xbf16>, vector<128x128xf32> -> vector<128x128xf32>
    %c0_51 = arith.constant 0 : index
    %c0_52 = arith.constant 0 : index
    %99 = vector.load %arg10[%c0_51, %c0_52] : memref<1x128xf32, #tpu.memory_space<vmem>>, vector<1x128xf32>
    %100 = vector.broadcast %99 : vector<1x128xf32> to vector<128x128xf32>
    %101 = arith.addf %98, %100 : vector<128x128xf32>
    %c0_53 = arith.constant 0 : index
    %c0_54 = arith.constant 0 : index
    %c0_55 = arith.constant 0 : index
    %102 = vector.load %arg2[%c0_53, %c0_54, %c0_55] : memref<1x128x128xf32, #tpu.memory_space<vmem>>, vector<1x128x128xf32>
    %103 = vector.shape_cast %102 : vector<1x128x128xf32> to vector<128x128xf32>
    %104 = arith.addf %101, %103 : vector<128x128xf32>
    %cst_56 = arith.constant 0.000000e+00 : f32
    %105 = vector.broadcast %cst_56 : f32 to vector<128x128xf32>
    %106 = arith.maximumf %104, %105 : vector<128x128xf32>
    %107 = arith.truncf %106 : vector<128x128xf32> to vector<128x128xbf16>
    %c0_57 = arith.constant 0 : index
    %c0_58 = arith.constant 0 : index
    %c0_59 = arith.constant 0 : index
    %108 = vector.load %arg11[%c0_57, %c0_58, %c0_59] : memref<1x128x128xbf16, #tpu.memory_space<vmem>>, vector<1x128x128xbf16>
    %109 = vector.shape_cast %108 : vector<1x128x128xbf16> to vector<128x128xbf16>
    %110 = vector.shape_cast %107 : vector<128x128xbf16> to vector<1x128x128xbf16>
    tpu.vector_store %arg11[%c0_57, %c0_58, %c0_59], %110 {strides = array<i32>} : memref<1x128x128xbf16, #tpu.memory_space<vmem>>, vector<1x128x128xbf16>,
    return
  }
  func.func @transform_0(%arg0: i32, %arg1: i32) -> (i32, i32, i32) {
    %c0_i32 = arith.constant 0 : i32
    %c0_i32_0 = arith.constant 0 : i32
    return %arg0, %arg1, %c0_i32 : i32, i32, i32
  }
  func.func @transform_1(%arg0: i32, %arg1: i32) -> (i32, i32, i32) {
    %c8_i32 = arith.constant 8 : i32
    %0 = arith.muli %arg1, %c8_i32 : i32
    %c1_i32 = arith.constant 1 : i32
    %1 = arith.subi %0, %c1_i32 : i32
    %c0_i32 = arith.constant 0 : i32
    %2 = arith.maxsi %1, %c0_i32 : i32
    %c0_i32_0 = arith.constant 0 : i32
    %c0_i32_1 = arith.constant 0 : i32
    return %arg0, %2, %c0_i32_0 : i32, i32, i32
  }
  func.func @transform_2(%arg0: i32, %arg1: i32) -> (i32, i32, i32) {
    %c8_i32 = arith.constant 8 : i32
    %0 = arith.muli %arg1, %c8_i32 : i32
    %c8_i32_0 = arith.constant 8 : i32
    %1 = arith.addi %0, %c8_i32_0 : i32
    %c15_i32 = arith.constant 15 : i32
    %2 = arith.minsi %1, %c15_i32 : i32
    %c0_i32 = arith.constant 0 : i32
    %c0_i32_1 = arith.constant 0 : i32
    return %arg0, %2, %c0_i32 : i32, i32, i32
  }
  func.func @transform_3(%arg0: i32, %arg1: i32) -> (i32, i32) {
    %c0_i32 = arith.constant 0 : i32
    %c0_i32_0 = arith.constant 0 : i32
    %c0_i32_1 = arith.constant 0 : i32
    return %c0_i32, %c0_i32_0 : i32, i32
  }
  func.func @transform_4(%arg0: i32, %arg1: i32) -> (i32, i32, i32) {
    %c0_i32 = arith.constant 0 : i32
    %c0_i32_0 = arith.constant 0 : i32
    %c0_i32_1 = arith.constant 0 : i32
    %c0_i32_2 = arith.constant 0 : i32
    return %c0_i32, %c0_i32_0, %c0_i32_1 : i32, i32, i32
  }
  func.func @transform_5(%arg0: i32, %arg1: i32) -> (i32, i32) {
    %c0_i32 = arith.constant 0 : i32
    %c0_i32_0 = arith.constant 0 : i32
    %c0_i32_1 = arith.constant 0 : i32
    return %c0_i32, %c0_i32_0 : i32, i32
  }
  func.func @transform_6(%arg0: i32, %arg1: i32) -> (i32, i32) {
    %c0_i32 = arith.constant 0 : i32
    %c0_i32_0 = arith.constant 0 : i32
    %c0_i32_1 = arith.constant 0 : i32
    return %c0_i32, %c0_i32_0 : i32, i32
  }
  func.func @transform_7(%arg0: i32, %arg1: i32) -> (i32, i32) {
    %c0_i32 = arith.constant 0 : i32
    %c0_i32_0 = arith.constant 0 : i32
    %c0_i32_1 = arith.constant 0 : i32
    return %c0_i32, %c0_i32_0 : i32, i32
  }
  func.func @transform_8(%arg0: i32, %arg1: i32) -> (i32, i32) {
    %c0_i32 = arith.constant 0 : i32
    %c0_i32_0 = arith.constant 0 : i32
    %c0_i32_1 = arith.constant 0 : i32
    return %c0_i32, %c0_i32_0 : i32, i32
  }
  func.func @transform_9(%arg0: i32, %arg1: i32) -> (i32, i32, i32) {
    %c0_i32 = arith.constant 0 : i32
    %c0_i32_0 = arith.constant 0 : i32
    return %arg0, %arg1, %c0_i32 : i32, i32, i32
  }
}

</mosaic_0001>

<bundles_post_ra>
// kernel: _lambda_.1
= control target key start
LH: loop header
LB: loop body
LE: loop exit
PB: predicated region body
PF: predicated region fallthrough
CT: control target
= control target key end

     0   :  { %14 = vsyncpa [#allocation4], 0  ;;  %s5890_s0 = inlined_call_operand.vmem [shape: f32[2,256,128], index: 0, kind: input, shape index: {}, may-alias: {0,1,2}]   ;;  %s5891_s1 = inlined_call_operand.vmem [shape: f32[2,256,128], index: 1, kind: input, shape index: {}, may-alias: {0,1,2}]   ;;  %s5892_s2 = inlined_call_operand.vmem [shape: f32[2,256,128], index: 2, kind: input, shape index: {}, may-alias: {0,1,2}]   ;;  %s5893_s3 = inlined_call_operand.vmem [shape: bf16[128,128], index: 3, kind: input, shape index: {}]   ;;  %s5894_s4 = inlined_call_operand.vmem [shape: bf16[3,384,128], index: 4, kind: input, shape index: {}]   ;;  %s5895_s5 = inlined_call_operand.vmem [shape: bf16[128,128], index: 5, kind: input, shape index: {}]   ;;  %s5896_s6 = inlined_call_operand.vmem [shape: f32[1,128], index: 6, kind: input, shape index: {}]   ;;  %s5897_s7 = inlined_call_operand.vmem [shape: f32[1,128], index: 7, kind: input, shape index: {}]   ;;  %s5898_s8 = inlined_call_operand.vmem [shape: f32[1,128], index: 8, kind: input, shape index: {}]   ;;  %s5899_s9 = inlined_call_operand.hbm [shape: bf16[2,256,128], index: 9, kind: output, shape index: {}]  }
   0x1   :  { %16 = vsyncpa [#allocation4 + $0x1], 0  ;;  %s4535_s30 = smov 0   ;;  %s4537_s10 = smov 0  }
   0x2   :  { %s4539_s11 = smov 0   ;;  %s4541_s12 = smov 0  }
   0x3   :  { %s4543_s13 = smov 0   ;;  %s4545_s14 = smov 0  }
   0x4   :  { %s4547_s15 = smov 0   ;;  %s4549_s16 = smov 0  }
   0x5 LB: > { %5909 = sst [smem:[#allocation6_spill]] %s4451_s30  ;;  %s3253_s17 = sadd.s32 4294967295, %s4479_s16   ;;  %s4479_s16 = sphi %s4549_s16, %s22_s16   ;;  %s4475_s15 = sphi %s4547_s15, %s6040_s15   ;;  %s4471_s14 = sphi %s4545_s14, %s6039_s14   ;;  %s4467_s13 = sphi %s4543_s13, %s6038_s13   ;;  %s4463_s12 = sphi %s4541_s12, %s6037_s12   ;;  %s4459_s11 = sphi %s4539_s11, %s6036_s11   ;;  %s4455_s10 = sphi %s4537_s10, %s6042_s10   ;;  %s4451_s30 = sphi %s4535_s30, %s6041_s30  }
   0x6   : > { %5910 = sst [smem:[#allocation7_spill]] %s4459_s11  ;;  %s3254_s18 = sadd.s32 4294967294, %s4479_s16  }
   0x7   : > { %5911 = sst [smem:[#allocation8_spill]] %s4471_s14  ;;  %s31_s19 = sadd.s32 1, %s4471_s14 }
   0x8   : > { %5912 = sst [smem:[#allocation9_spill]] %s4475_s15  ;;  %p32_p0 = scmp.ge.s32.totalorder %s31_s19, 2 }
   0x9   : > { %s34_s20 = sadd.s32 1, %s4475_s15  ;;  %p279_p1 = scmp.ne.s32.totalorder %s4459_s11, %s4455_s10 }
   0xa   : > { %p280_p2 = scmp.eq.s32.totalorder %s3253_s17, 3  ;;  %s6044_s19 = smov (%p32_p0, %s31_s19), 0 }
   0xb   : > { %5913 = sst [smem:[#allocation10_spill]] %s6044_s19  ;;  %s6046_s20 = smov (!%p32_p0, %s34_s20), %s4475_s15 }
   0xc   : > { %s265_s21 = ssub.s32 %s4471_s14, %s6044_s19  ;;  %p4586_p3 = por %p280_p2, %p279_p1 }
   0xd   : > { %p36_p4 = scmp.ge.s32.totalorder %s6046_s20, 2  ;;  %p285_p5 = scmp.ne.s32.totalorder %s4455_s10, %s4451_s30 }
   0xe   : > { %p286_p6 = scmp.eq.s32.totalorder %s3254_s18, 3  ;;  %p3263_p7 = scmp.ge.s32.totalorder %s4479_s16, 1 }
   0xf   : > { %s6048_s20 = smov (%p36_p4, %s6046_s20), 0  ;;  %p377_p9 = scmp.lt.s32.totalorder %s4479_s16, 5 }
  0x10   : > { %5915 = sst [smem:[#allocation11_spill]] %s6048_s20  ;;  %p4595_p8 = por %p286_p6, %p285_p5 }
  0x11   : > { %s264_s24 = ssub.s32 %s4475_s15, %s6048_s20  ;;  %s269_s25 = sadd.s32 1, %s4459_s11 }
  0x12   : > { %s5916_s23 = scalar_select %p4595_p8, 1, 0 }
  0x13   : > { %s266_s26 = sor.u32 %s265_s21, %s264_s24  ;;  %p378_p10 = pnand %p3263_p7, %p377_p9 }
  0x14   : > { %5917 = sst [smem:[#allocation12_spill]] %s5916_s23  ;;  %p267_p11 = scmp.eq.s32.totalorder %s266_s26, 0 }
  0x15   : > { %381 = sbr.rel (%p378_p10) target bundleno = 881 (0x371), region = 56 }
  0x16   : > { %s4604_s27 = scalar_select %p267_p11, %s4459_s11, %s269_s25  }
  0x18   : > { %5918 = sst [smem:[#allocation13_spill]] %s4604_s27 }
  0x1a   : > { %v4299_v0 = vld [vmem:[%s5893_s3 + $0x38] sm:$0xff]   ;;  %s4610_s17 = sshll.u32 %s4463_s12, 4  ;;  %v4300_v1 = vld [vmem:[%s5893_s3 + $0x30] sm:$0xff]   ;;  %p444_p12 = scmp.lt.s32.totalorder %s4467_s13, 1  ;;  %v4301_v2 = vld [vmem:[%s5893_s3 + $0x28] sm:$0xff]   ;;  %vm1336_vm4 = vcmask 1046528  }
  0x1b   : > { %4045 = vmatprep.subr.bf16.mxu0 %v4299_v0  ;;  %p446_p13 = scmp.lt.s32.totalorder %s4610_s17, 31  ;;  %s3268_s26 = sshll.u32 %s4463_s12, 3  ;;  %v4302_v3 = vld [vmem:[%s5893_s3 + $0x20] sm:$0xff]   ;;  %v4303_v4 = vld [vmem:[%s5893_s3 + $0x18] sm:$0xff]   ;;  %v4304_v5 = vld [vmem:[%s5893_s3 + $0x10] sm:$0xff]   ;;  %vm4481_vm6 = vmmov 1  }
  0x1c   : > { %4046 = vmatpush3.bf16.msra.mxu0 %v4299_v0  ;;  %s445_s25 = scalar_select %p444_p12, %s4467_s13, 1  ;;  %v4305_v6 = vld [vmem:[%s5893_s3 + $0x8] sm:$0xff]   ;;  %v4306_v10 = vld [vmem:[%s5893_s3] sm:$0xff]   ;;  %v4307_v15 = vld [vmem:[%s5894_s4 + $0xb8] sm:$0xff]   ;;  %v725_v0 = vlaneseq }
  0x1d   : > { %4047 = vmatprep.subr.bf16.mxu0 %v4300_v1  ;;  %s447_s28 = scalar_select %p446_p13, %s4610_s17, 31  ;;  %v4308_v17 = vld [vmem:[%s5894_s4 + $0xb0] sm:$0xff]   ;;  %v4309_v23 = vld [vmem:[%s5894_s4 + $0xa8] sm:$0xff]   ;;  %v4310_v41 = vld [vmem:[%s5894_s4 + $0xa0] sm:$0xff]  }
  0x1e   : > { %s3269_s19 = sadd.s32 4294967295, %s3268_s26  ;;  %s472_s18 = sadd.s32 8, %s3268_s26  ;;  %v4311_v42 = vld [vmem:[%s5894_s4 + $0x98] sm:$0xff]   ;;  %v4312_v43 = vld [vmem:[%s5894_s4 + $0x90] sm:$0xff]   ;;  %v4313_v44 = vld [vmem:[%s5894_s4 + $0x88] sm:$0xff]  }
  0x1f   : > { %p455_p0 = scmp.gt.s32.totalorder %s3269_s19, 0  ;;  %s4626_s15 = sshll.u32 %s445_s25, 5  ;;  %v4314_v45 = vld [vmem:[%s5894_s4 + $0x78] sm:$0xff]   ;;  %v4316_v47 = vld [vmem:[%s5894_s4 + $0x80] sm:$0xff]   ;;  %v4317_v48 = vld [vmem:[%s5894_s4 + $0x70] sm:$0xff]  }
  0x20   : > { %4048 = vmatpush3.bf16.msra.mxu0 %v4300_v1  ;;  %p473_p1 = scmp.lt.s32.totalorder %s472_s18, 15  ;;  %s449_s27 = sadd.s32 %s4626_s15, %s447_s28  ;;  %v4315_v46 = vld [vmem:[%s5894_s4 + $0x38] sm:$0xff]   ;;  %3789 = vmatprep.subr.bf16.mxu1 %v4314_v45  ;;  %v4318_v49 = vld [vmem:[%s5894_s4 + $0x30] sm:$0xff]   ;;  %v4320_v51 = vld [vmem:[%s5894_s4 + $0x68] sm:$0xff]   ;;  %v4755_v1 = vshrl.u32 %v725_v0, 7 }
  0x21   : > { %4049 = vmatprep.subr.bf16.mxu0 %v4301_v2  ;;  %s6050_s19 = smov (!%p455_p0, %s3269_s19), 0  ;;  %3790 = vmatpush3.bf16.msra.mxu1 %v4315_v46  ;;  %v4712_v50 = vld [vmem:[%s5894_s4 + $0x178] sm:$0xff]   ;;  %v4321_v52 = vld [vmem:[%s5894_s4 + $0x28] sm:$0xff]   ;;  %v4323_v53 = vld [vmem:[%s5894_s4 + $0x60] sm:$0xff]   ;;  %p766_p5 = scmp.eq.s32.totalorder %s4463_s12, 0 }
  0x22   : > { %s3270_s14 = sshll.u32 %s6050_s19, 1  ;;  %s6052_s18 = smov (!%p473_p1, %s472_s18), 15  ;;  %3791 = vmatprep.subr.bf16.mxu1 %v4317_v48  ;;  %v4324_v54 = vld [vmem:[%s5894_s4 + $0x20] sm:$0xff]   ;;  %v4326_v55 = vld [vmem:[%s5894_s4 + $0x58] sm:$0xff]   ;;  %v4329_v57 = vld [vmem:[%s5894_s4 + $0x50] sm:$0xff]   ;;  %v733_v46 = vadd.s32 56, %v4755_v1 }
  0x23   : > { %p460_p2 = scmp.lt.s32.totalorder %s3270_s14, 31  ;;  %s3274_s25 = sshll.u32 %s6052_s18, 1  ;;  %v4327_v56 = vld [vmem:[%s5894_s4 + $0x18] sm:$0xff]   ;;  %v4330_v58 = vld [vmem:[%s5894_s4 + $0x10] sm:$0xff]   ;;  %v4332_v59 = vld [vmem:[%s5894_s4 + $0x48] sm:$0xff]  }
  0x24   : > { %4050 = vmatpush3.bf16.msra.mxu0 %v4301_v2  ;;  %p478_p4 = scmp.lt.s32.totalorder %s3274_s25, 31  ;;  %s3267_s19 = sshll.u32 %s449_s27, 3  ;;  %v4333_v60 = vld [vmem:[%s5894_s4 + $0x8] sm:$0xff]   ;;  %v4335_v61 = vld [vmem:[%s5894_s4 + $0x40] sm:$0xff]   ;;  %v4338_v63 = vld [vmem:[%s5894_s4 + $0x138] sm:$0xff]  }
  0x25   : > { %4051 = vmatprep.subr.bf16.mxu0 %v4302_v3  ;;  %s6054_s14 = smov (!%p460_p2, %s3270_s14), 31  ;;  %s4645_s18 = scalar_lea.vmem %s5890_s0, %s3267_s19  ;;  %3792 = vmatpush3.bf16.msra.mxu1 %v4318_v49  ;;  %v4336_v62 = vld [vmem:[%s5894_s4] sm:$0xff]  }
  0x26   : > { %s463_s23 = sadd.s32 %s4626_s15, %s6054_s14  ;;  %s6056_s25 = smov (!%p478_p4, %s3274_s25), 31  ;;  %v494_v11 = vld [vmem:[%s4645_s18] sm:$0xff]  ;;  %v495_v12 = vld [vmem:[%s4645_s18 + $0x8] sm:$0xff]  ;;  %v496_v13 = vld [vmem:[%s4645_s18 + $0x10] sm:$0xff]  ;;  %3793 = vmatprep.subr.bf16.mxu1 %v4320_v51 }
  0x27   : > { %s3272_s28 = sshll.u32 %s463_s23, 3  ;;  %s481_s11 = sadd.s32 %s4626_s15, %s6056_s25  ;;  %v497_v14 = vld [vmem:[%s4645_s18 + $0x18] sm:$0xff]  ;;  %v510_v16 = vpack.c.bf16 %v495_v12, %v494_v11  ;;  %v498_v19 = vld [vmem:[%s4645_s18 + $0x20] sm:$0xff]  ;;  %v499_v20 = vld [vmem:[%s4645_s18 + $0x28] sm:$0xff] }
  0x28   : > { %4052 = vmatpush3.bf16.msra.mxu0 %v4302_v3  ;;  %s465_s30 = scalar_lea.vmem %s5891_s1, %s3272_s28  ;;  %v511_v18 = vpack.c.bf16 %v497_v14, %v496_v13  ;;  %v500_v21 = vld [vmem:[%s4645_s18 + $0x30] sm:$0xff]  ;;  %v501_v22 = vld [vmem:[%s4645_s18 + $0x38] sm:$0xff]  ;;  %v512_v24 = vpack.c.bf16 %v499_v20, %v498_v19  ;;  %v502_v26 = vld [vmem:[%s4645_s18 + $0x40] sm:$0xff]  ;;  %v729_v14 = vadd.s32 24, %v4755_v1  ;;  %p810_p6 = scmp.eq.s32.totalorder %s4463_s12, 1 }
  0x29   : > { %4053 = vmatprep.subr.bf16.mxu0 %v4303_v4  ;;  %v491_v7 = vld [vmem:[%s465_s30] sm:$0xff]  ;;  %v492_v8 = vld [vmem:[%s465_s30 + $0x8] sm:$0xff]  ;;  %s4655_s30 = sshll.u32 %s481_s11, 3  ;;  %v513_v25 = vpack.c.bf16 %v501_v22, %v500_v21  ;;  %v504_v28 = vld [vmem:[%s4645_s18 + $0x50] sm:$0xff]  ;;  %3794 = vmatpush3.bf16.msra.mxu1 %v4321_v52  ;;  %s440_s26 = sand.u32 1, %s4455_s10  }
  0x2a   : > { %v493_v9 = vpack.c.bf16 %v492_v8, %v491_v7  ;;  %v503_v27 = vld [vmem:[%s4645_s18 + $0x48] sm:$0xff]  ;;  %v505_v29 = vld [vmem:[%s4645_s18 + $0x58] sm:$0xff]  ;;  %v506_v32 = vld [vmem:[%s4645_s18 + $0x60] sm:$0xff]  ;;  %s483_s20 = scalar_lea.vmem %s5892_s2, %s4655_s30  ;;  %3795 = vmatprep.subr.bf16.mxu1 %v4323_v53  ;;  %v727_v7 = vadd.s32 8, %v4755_v1  ;;  %s3264_s11 = sshll.u32 %s440_s26, 6 }
  0x2b   : > { %v514_v30 = vpack.c.bf16 %v503_v27, %v502_v26  ;;  %v515_v31 = vpack.c.bf16 %v505_v29, %v504_v28  ;;  %v507_v33 = vld [vmem:[%s4645_s18 + $0x68] sm:$0xff]  ;;  %v508_v34 = vld [vmem:[%s4645_s18 + $0x70] sm:$0xff]  ;;  %v509_v35 = vld [vmem:[%s4645_s18 + $0x78] sm:$0xff]  ;;  %s767_s30 = scalar_select %p766_p5, 1, 0 }
  0x2c   : > { %4054 = vmatpush3.bf16.msra.mxu0 %v4303_v4  ;;  %4061 = vmatprep.mubr.bf16.mxu0 %v493_v9  ;;  %v516_v36 = vpack.c.bf16 %v507_v33, %v506_v32  ;;  %v517_v37 = vpack.c.bf16 %v509_v35, %v508_v34  ;;  %v518_v38 = vld [vmem:[%s483_s20] sm:$0xff]  ;;  %v519_v39 = vld [vmem:[%s483_s20 + $0x8] sm:$0xff]  ;;  %s4891_s20 = scalar_select %p810_p6, 1, 0 }
  0x2d   : > { %4055 = vmatprep.subr.bf16.mxu0 %v4304_v5  ;;  %v520_v40 = vpack.c.bf16 %v519_v39, %v518_v38  ;;  %3796 = vmatpush3.bf16.msra.mxu1 %v4324_v54  ;;  %v4760_v3 = vld [vmem:[%s5896_s6] ss:$0 sm:$0xff]  ;;  %s5796_s14 = scalar_lea.vmem [#allocation3], %s3264_s11  ;;  %s3684_s23 = sshll.u32 %s4467_s13, 5 }
  0x2e   : > { %3797 = vmatprep.subr.bf16.mxu1 %v4326_v55  ;;  %v4322_v55 = vld [vmem:[%s5894_s4 + $0x170] sm:$0xff]   ;;  %s4482_s19 = smov [#allocation3]  }
  0x2f   : > { %s4391_s28 = sshll.u32 %s4482_s19, 4  ;;  %s4392_s28 = int_to_ptr.vmem [resolvable:$false] %s4391_s28 }
  0x30   : > { %4056 = vmatpush3.bf16.msra.mxu0 %v4304_v5  ;;  %s4393_s21 = scalar_lea.vmem %s4392_s28, 2048 }
  0x31   : > { %4057 = vmatprep.subr.bf16.mxu0 %v4305_v6  ;;  %3798 = vmatpush3.bf16.msra.mxu1 %v4327_v56  ;;  %v735_v56 = vadd.s32 72, %v4755_v1 }
  0x32   : > { %3799 = vmatprep.subr.bf16.mxu1 %v4329_v57 }
  0x34   : > { %4058 = vmatpush3.bf16.msra.mxu0 %v4305_v6  ;;  %v768_v6 = vstv %s767_s30  ;;  %s3132_s30 = sadd.s32 %s3684_s23, %s4610_s17  ;;  %s3135_s17 = sshll.u32 %s5796_s14, 4  ;;  %s5834_s17 = int_to_ptr.vmem [resolvable:$true] %s3135_s17 }
  0x35   : > { %4059 = vmatprep.subr.bf16.mxu0 %v4306_v10  ;;  %3800 = vmatpush3.bf16.msra.mxu1 %v4330_v58  ;;  %vm4766_vm0 = vcmp.eq.s32.totalorder %v768_v6, 1  ;;  %s3685_s13 = sshll.u32 %s3132_s30, 6  ;;  %s4387_s25 = scalar_lea.vmem %s5834_s17, 1024 }
  0x36   : > { %3801 = vmatprep.subr.bf16.mxu1 %v4332_v59  ;;  %vm3310_vm1 = vmneg %vm4766_vm0  ;;  %s5831_s15 = scalar_lea.hbm %s5899_s9, %s3685_s13  ;;  %p4388_p7 = scmp.ne.s32.totalorder %s5834_s17, %s4387_s25 }
  0x37   : > { %vm3312_vm2 = vmpackc.low %vm3310_vm1, %vm3310_vm1  ;;  %p4394_p11 = scmp.lt.s32.totalorder %s5834_s17, %s4392_s28  ;;  %p4395_p12 = scmp.lt.s32.totalorder %s4393_s21, %s4387_s25 }
  0x38   : > { %4060 = vmatpush3.bf16.msra.mxu0 %v4306_v10  ;;  %p4389_p9 = pnand %p4388_p7, %p4586_p3 }
  0x39   : > { %4081 = vmatprep.subr.bf16.mxu0 %v4307_v15  ;;  %3802 = vmatpush3.bf16.msra.mxu1 %v4333_v60  ;;  %p4396_p13 = por %p4395_p12, %p4394_p11 }
  0x3a   : > { %3803 = vmatprep.subr.bf16.mxu1 %v4335_v61  ;;  %p4390_p10 = pneg %p4389_p9 }
  0x3b   : > { %4062 = vmatmul.mubr.bf16.vlgmr.msra.gmra.mxu0 %v510_v16  ;;  %v925_v16 = vand.u32 15, %v727_v7 }
  0x3c   : > { %4065 = vmatprep.mubr.bf16.mxu0 %v511_v18  ;;  %4082 = vmatpush3.bf16.msra.mxu0 %v4307_v15  ;;  %p4397_p0 = pnand %p4396_p13, %p4390_p10 }
  0x3d   : > { %4083 = vmatprep.subr.bf16.mxu0 %v4308_v17  ;;  %3804 = vmatpush3.bf16.msra.mxu1 %v4336_v62  ;;  %vm4789_vm3 = vcmp.ne.s32.totalorder %v925_v16, 15 }
  0x3e   : > { %3869 = vmatprep.subr.bf16.mxu1 %v4338_v63  ;;  %vm3348_vm7 = vmpackc.low %vm4789_vm3, %vm4481_vm6  ;;  %v967_v63 = vand.u32 15, %v733_v46  ;;  %v4331_v46 = vld [vmem:[%s5894_s4 + $0x158] sm:$0xff]  }
  0x40   : > { %4084 = vmatpush3.bf16.msra.mxu0 %v4308_v17  ;;  %vm3764_vm11 = vcmp.ne.s32.totalorder %v967_v63, 15 }
  0x41   : > { %4085 = vmatprep.subr.bf16.mxu0 %v4309_v23  ;;  %vm4885_vm13 = vmpackc.low %vm3764_vm11, %vm4481_vm6 }
  0x43   : > { %4066 = vmatmul.mubr.bf16.gmra.mxu0 %v512_v24  ;;  %v731_v24 = vadd.s32 40, %v4755_v1 }
  0x44   : > { %4069 = vmatprep.mubr.bf16.mxu0 %v513_v25  ;;  %4086 = vmatpush3.bf16.msra.mxu0 %v4309_v23  ;;  %v939_v23 = vand.u32 15, %v729_v14 }
  0x45   : > { %4087 = vmatprep.subr.bf16.mxu0 %v4310_v41  ;;  %v953_v39 = vand.u32 15, %v731_v24 }
  0x46   : > { %vm3762_vm5 = vcmp.ne.s32.totalorder %v939_v23, 15  ;;  %v4328_v23 = vld [vmem:[%s5894_s4 + $0x160] sm:$0xff]  }
  0x47   : > { %vm4817_vm8 = vmpackc.low %vm3762_vm5, %vm4481_vm6  ;;  %vm4823_vm9 = vcmp.ne.s32.totalorder %v953_v39, 15 }
  0x48   : > { %4088 = vmatpush3.bf16.msra.mxu0 %v4310_v41  ;;  %vm4848_vm10 = vmpackc.low %vm4823_vm9, %vm4481_vm6 }
  0x49   : > { %4089 = vmatprep.subr.bf16.mxu0 %v4311_v42 }
  0x4b   : > { %4070 = vmatmul.mubr.bf16.gmra.mxu0 %v514_v30 }
  0x4c   : > { %4073 = vmatprep.mubr.bf16.mxu0 %v515_v31  ;;  %4090 = vmatpush3.bf16.msra.mxu0 %v4311_v42 }
  0x4d   : > { %4091 = vmatprep.subr.bf16.mxu0 %v4312_v43 }
  0x50   : > { %4092 = vmatpush3.bf16.msra.mxu0 %v4312_v43 }
  0x51   : > { %4093 = vmatprep.subr.bf16.mxu0 %v4313_v44 }
  0x53   : > { %4074 = vmatmul.mubr.bf16.gmra.mxu0 %v516_v36 }
  0x54   : > { %4077 = vmatprep.mubr.bf16.mxu0 %v517_v37  ;;  %4094 = vmatpush3.bf16.msra.mxu0 %v4313_v44 }
  0x55   : > { %4095 = vmatprep.subr.bf16.mxu0 %v4316_v47 }
  0x58   : > { %4096 = vmatpush3.bf16.msra.mxu0 %v4316_v47 }
  0x59   : > { %4113 = vmatprep.subr.bf16.mxu0 %v4712_v50 }
  0x5b   : > { %4078 = vmatmul.mubr.bf16.gmra.mxu0 %v520_v40 }
  0xfb   : > { %v4063_v2 = vpop.f32.mrf.mxu0 }
  0xfc   : > { %v635_v8 = vadd.f32 %v4063_v2, %v4760_v3 }
  0xfd   : > { %v626_v4 = vpop.f32.mrf.mxu0 }
  0xfe   : > { %v627_v5 = vadd.f32 %v4760_v3, %v626_v4  ;;  %v4772_v17 = vmax.f32 %v635_v8, 0.0  ;;  %v4325_v8 = vld [vmem:[%s5894_s4 + $0x168] sm:$0xff]  }
  0xff   : > { %v4064_v9 = vpop.f32.mrf.mxu0 }
 0x100   : > { %v705_v10 = vmax.f32 %v627_v5, 0.0  ;;  %v638_v11 = vadd.f32 %v4064_v9, %v4760_v3  ;;  %v1340_v29 = vrot.slane %v4772_v17, 1  ;;  %v737_v9 = vadd.s32 88, %v4755_v1 }
 0x101   : > { %v629_v13 = vpop.f32.mrf.mxu0 }
 0x102   : > { %v630_v15 = vadd.f32 %v4760_v3, %v629_v13  ;;  %v4778_v19 = vsel %vm4766_vm0, 0.0, %v705_v10  ;;  %v4780_v20 = vmax.f32 %v638_v11, 0.0  ;;  %v995_v24 = vand.u32 15, %v737_v9 }
 0x103   : > { %v4067_v18 = vpop.f32.mrf.mxu0  ;;  %v1337_v30 = vrot.slane %v4778_v19, 1 }
 0x104   : > { %v706_v21 = vmax.f32 %v630_v15, 0.0  ;;  %v651_v26 = vadd.f32 %v4067_v18, %v4760_v3  ;;  %v1342_v34 = vrot.slane %v4780_v20, 1  ;;  %vm4906_vm14 = vcmp.ne.s32.totalorder %v995_v24, 15 }
 0x105   : > { %v642_v22 = vpop.f32.mrf.mxu0  ;;  %vm4958_vm3 = vmpackc.low %vm4906_vm14, %vm4481_vm6  ;;  %v1202_v51 = vrot.slane %v4780_v20, 7 }
 0x106   : > { %v4785_v25 = vsel %vm4766_vm0, 0.0, %v706_v21  ;;  %v643_v27 = vadd.f32 %v4760_v3, %v642_v22  ;;  %v3313_v33 = vpack.c.bf16 %v706_v21, %v705_v10  ;;  %v4803_v40 = vmax.f32 %v651_v26, 0.0 }
 0x107   : > { %v1338_v31 = vrot.slane %v4785_v25, 1  ;;  %v4068_v32 = vpop.f32.mrf.mxu0  ;;  %v1343_v47 = vsel %vm1336_vm4, %v1340_v29, %v1342_v34  ;;  %v739_v26 = vadd.s32 104, %v4755_v1 }
 0x108   : > { %v4797_v35 = vmax.f32 %v643_v27, 0.0  ;;  %3314 = vmatprep.mubr.msk.bf16.mxu1 %vm3312_vm2, %v3313_v33  ;;  %v654_v42 = vadd.f32 %v4068_v32, %v4760_v3  ;;  %v1348_v57 = vrot.slane %v4803_v40, 1  ;;  %vm1196_vm2 = vcmask 1040384  }
 0x109   : > { %v645_v36 = vpop.f32.mrf.mxu0  ;;  %v1339_v37 = vsel %vm1336_vm4, %v1337_v30, %v1338_v31  ;;  %v1341_v38 = vsel %vm1336_vm4, %v1338_v31, %v1340_v29 }
 0x10a   : > { %v1344_v41 = vrot.slane %v4797_v35, 1  ;;  %v646_v43 = vadd.f32 %v4760_v3, %v645_v36  ;;  %v3349_v45 = vpack.c.bf16 %v1341_v38, %v1339_v37  ;;  %v4832_v58 = vmax.f32 %v654_v42, 0.0 }
 0x10b   : > { %v4071_v44 = vpop.f32.mrf.mxu0  ;;  %v741_v38 = vadd.s32 120, %v4755_v1 }
 0x10c   : > { %v1345_v48 = vsel %vm1336_vm4, %v1342_v34, %v1344_v41  ;;  %v4814_v49 = vmax.f32 %v646_v43, 0.0  ;;  %4097 = vmatprep.mubr.msk.bf16.mxu0 %vm3348_vm7, %v3349_v45  ;;  %v667_v61 = vadd.f32 %v4071_v44, %v4760_v3  ;;  %v1350_v10 = vrot.slane %v4832_v58, 1 }
 0x10d   : > { %v4821_v52 = vpack.c.bf16 %v1345_v48, %v1343_v47  ;;  %v658_v53 = vpop.f32.mrf.mxu0  ;;  %v1009_v47 = vand.u32 15, %v739_v26  ;;  %v4339_v26 = vld [vmem:[%s5894_s4 + $0xf8] sm:$0xff]  }
 0x10e   : > { %v1346_v59 = vrot.slane %v4814_v49, 1  ;;  %v659_v60 = vadd.f32 %v4760_v3, %v658_v53  ;;  %v4863_v14 = vmax.f32 %v667_v61, 0.0  ;;  %v1351_v31 = vsel %vm1336_vm4, %v1348_v57, %v1350_v10 }
 0x10f   : > { %v4072_v62 = vpop.f32.mrf.mxu0  ;;  %4098 = vmatmul.mubr.msk.bf16.vlgmr.msra.gmra.mxu0 %vm4817_vm8, %v4821_v52  ;;  %vm4944_vm1 = vcmp.ne.s32.totalorder %v1009_v47, 15 }
 0x110   : > { %v4840_v0 = vmax.f32 %v659_v60, 0.0  ;;  %4114 = vmatpush3.bf16.msra.mxu0 %v4712_v50  ;;  %v1347_v2 = vsel %vm1336_vm4, %v1344_v41, %v1346_v59  ;;  %v1349_v4 = vsel %vm1336_vm4, %v1346_v59, %v1348_v57  ;;  %v981_v50 = vand.u32 15, %v735_v56  ;;  %vm5002_vm9 = vmpackc.low %vm4944_vm1, %vm4481_vm6 }
 0x111   : > { %v661_v6 = vpop.f32.mrf.mxu0  ;;  %v4852_v7 = vpack.c.bf16 %v1349_v4, %v1347_v2  ;;  %4115 = vmatprep.subr.bf16.mxu0 %v4322_v55  ;;  %v670_v12 = vadd.f32 %v4072_v62, %v4760_v3  ;;  %v1356_v33 = vrot.slane %v4863_v14, 1  ;;  %v1023_v62 = vand.u32 15, %v741_v38 }
 0x112   : > { %v1352_v11 = vrot.slane %v4840_v0, 1  ;;  %v662_v13 = vadd.f32 %v4760_v3, %v661_v6  ;;  %vm4871_vm12 = vcmp.ne.s32.totalorder %v981_v50, 15  ;;  %v918_v4 = vand.u32 15, %v4755_v1  ;;  %v4378_v6 = vld [vmem:[%s5894_s4 + $0x200] sm:$0xff]  }
 0x113   : > { %v4075_v15 = vpop.f32.mrf.mxu0  ;;  %4101 = vmatprep.mubr.msk.bf16.mxu0 %vm4848_vm10, %v4852_v7  ;;  %v4879_v27 = vmax.f32 %v670_v12, 0.0  ;;  %vm4920_vm15 = vmpackc.low %vm4871_vm12, %vm4481_vm6  ;;  %vm4966_vm5 = vcmp.ne.s32.totalorder %v1023_v62, 15 }
 0x114   : > { %v4868_v16 = vmax.f32 %v662_v13, 0.0  ;;  %4116 = vmatpush3.bf16.msra.mxu0 %v4322_v55  ;;  %v1353_v21 = vsel %vm1336_vm4, %v1350_v10, %v1352_v11  ;;  %v683_v34 = vadd.f32 %v4075_v15, %v4760_v3  ;;  %v812_v55 = vstv %s4891_s20  ;;  %v4334_v10 = vld [vmem:[%s5894_s4 + $0x150] sm:$0xff]   ;;  %vm5034_vm11 = vmpackc.low %vm4966_vm5, %vm4481_vm6 }
 0x115   : > { %v674_v18 = vpop.f32.mrf.mxu0  ;;  %4117 = vmatprep.subr.bf16.mxu0 %v4325_v8  ;;  %v4895_v37 = vpack.c.bf16 %v1353_v21, %v1351_v31  ;;  %v1358_v48 = vrot.slane %v4879_v27, 1  ;;  %vm4936_vm0 = vcmp.eq.s32.totalorder %v812_v55, 1  ;;  %vm4976_vm7 = vcmp.ne.s32.totalorder %v918_v4, 0 }
 0x116   : > { %v1354_v28 = vrot.slane %v4868_v16, 1  ;;  %v675_v29 = vadd.f32 %v4760_v3, %v674_v18  ;;  %v4924_v57 = vmax.f32 %v683_v34, 0.0  ;;  %v1198_v34 = vrot.slane %v4785_v25, 7  ;;  %vm5048_vm12 = vmpackc.low %vm4481_vm6, %vm4976_vm7  ;;  %v4380_v18 = vld [vmem:[%s5895_s5 + $0x30] sm:$0xff]  }
 0x117   : > { %v4076_v36 = vpop.f32.mrf.mxu0  ;;  %4102 = vmatmul.mubr.msk.bf16.gmra.mxu0 %vm4885_vm13, %v4895_v37  ;;  %v1359_v15 = vsel %vm1336_vm4, %v1356_v33, %v1358_v48 }
 0x118   : > { %v4898_v39 = vmax.f32 %v675_v29, 0.0  ;;  %v686_v41 = vadd.f32 %v4076_v36, %v4760_v3  ;;  %4118 = vmatpush3.bf16.msra.mxu0 %v4325_v8  ;;  %v1355_v43 = vsel %vm1336_vm4, %v1352_v11, %v1354_v28  ;;  %v1357_v44 = vsel %vm1336_vm4, %v1354_v28, %v1356_v33 }
 0x119   : > { %v677_v42 = vpop.f32.mrf.mxu0  ;;  %4119 = vmatprep.subr.bf16.mxu0 %v4328_v23  ;;  %v4928_v61 = vpack.c.bf16 %v1357_v44, %v1355_v43  ;;  %v1364_v21 = vrot.slane %v4924_v57, 1  ;;  %v728_v43 = vadd.s32 16, %v4755_v1 }
 0x11a   : > { %v1360_v53 = vrot.slane %v4898_v39, 1  ;;  %v678_v54 = vadd.f32 %v4760_v3, %v677_v42  ;;  %v4926_v59 = vmax.f32 %v686_v41, 0.0  ;;  %v4337_v42 = vld [vmem:[%s5894_s4 + $0x148] sm:$0xff]  }
 0x11b   : > { %v4079_v60 = vpop.f32.mrf.mxu0  ;;  %4105 = vmatprep.mubr.msk.bf16.mxu0 %vm4920_vm15, %v4928_v61 }
 0x11c   : > { %v4930_v63 = vmax.f32 %v678_v54, 0.0  ;;  %v4933_v2 = vadd.f32 %v4079_v60, %v4760_v3  ;;  %4120 = vmatpush3.bf16.msra.mxu0 %v4328_v23  ;;  %v1361_v50 = vsel %vm1336_vm4, %v1358_v48, %v1360_v53  ;;  %v1366_v22 = vrot.slane %v4926_v59, 1 }
 0x11d   : > { %v690_v8 = vpop.f32.mrf.mxu0  ;;  %4121 = vmatprep.subr.bf16.mxu0 %v4331_v46  ;;  %v4964_v24 = vpack.c.bf16 %v1361_v50, %v1359_v15  ;;  %v1226_v54 = vrot.slane %v4926_v59, 7  ;;  %v4340_v15 = vld [vmem:[%s5894_s4 + $0x140] sm:$0xff]  }
 0x11e   : > { %v1362_v11 = vrot.slane %v4930_v63, 1  ;;  %v723_v12 = vmax.f32 %v4933_v2, 0.0  ;;  %v691_v13 = vadd.f32 %v4760_v3, %v690_v8  ;;  %v1367_v60 = vsel %vm1336_vm4, %v1364_v21, %v1366_v22 }
 0x11f   : > { %v4080_v23 = vpop.f32.mrf.mxu0  ;;  %4106 = vmatmul.mubr.msk.bf16.gmra.mxu0 %vm4958_vm3, %v4964_v24  ;;  %v745_v2 = vadd.s32 152, %v4755_v1 }
 0x120   : > { %v4970_v28 = vmax.f32 %v691_v13, 0.0  ;;  %v4973_v29 = vadd.f32 %v4080_v23, %v4760_v3  ;;  %4122 = vmatpush3.bf16.msra.mxu0 %v4331_v46  ;;  %v1363_v31 = vsel %vm1336_vm4, %v1360_v53, %v1362_v11  ;;  %v4985_v36 = vsel %vm4936_vm0, 0.0, %v723_v12 }
 0x121   : > { %v693_v38 = vpop.f32.mrf.mxu0  ;;  %v1365_v41 = vsel %vm1336_vm4, %v1362_v11, %v1364_v21  ;;  %4123 = vmatprep.subr.bf16.mxu0 %v4334_v10  ;;  %v1197_v53 = vrot.slane %v4778_v19, 7  ;;  %v1232_v62 = vrot.slane %v4985_v36, 7  ;;  %v1372_v50 = vrot.slane %v4985_v36, 1  ;;  %v4341_v19 = vld [vmem:[%s5894_s4 + $0x1f8] sm:$0xff]  }
 0x122   : > { %v1228_v44 = vrot.slane %v4970_v28, 7  ;;  %v1368_v45 = vrot.slane %v4970_v28, 1  ;;  %v724_v46 = vmax.f32 %v4973_v29, 0.0  ;;  %v694_v47 = vadd.f32 %v4760_v3, %v693_v38  ;;  %v4355_v38 = vld [vmem:[%s5894_s4 + $0x120] sm:$0xff]  }
 0x123   : > { %v5008_v55 = vpack.c.bf16 %v1365_v41, %v1363_v31  ;;  %v5949_v21 = vmov 0  ;;  %v5959_v36 = vmov 0  ;;  %v1051_v5 = vand.u32 15, %v745_v2 }
 0x124   : > { %v913_v3 = vsel %vm4936_vm0, 0.0, %v724_v46  ;;  %v5016_v4 = vmax.f32 %v694_v47, 0.0  ;;  %4124 = vmatpush3.bf16.msra.mxu0 %v4334_v10  ;;  %v1369_v8 = vsel %vm1336_vm4, %v1366_v22, %v1368_v45  ;;  %v5950_v21 = vsel %vm5034_vm11, 4294967295, %v5949_v21 }
 0x125   : > { %v1175_v9 = vrot.slane %v913_v3, 7  ;;  %v1374_v11 = vrot.slane %v913_v3, 1  ;;  %4109 = vmatprep.mubr.msk.bf16.mxu0 %vm5002_vm9, %v5008_v55  ;;  %v5025_v13 = vpack.c.bf16 %v1369_v8, %v1367_v60  ;;  %4125 = vmatprep.subr.bf16.mxu0 %v4337_v42  ;;  %v1199_v22 = vsel %vm1196_vm2, %v1197_v53, %v1198_v34  ;;  %v4343_v60 = vld [vmem:[%s5894_s4 + $0x130] sm:$0xff]  }
 0x126   : > { %v1230_v10 = vrot.slane %v5016_v4, 7  ;;  %v1229_v23 = vsel %vm1196_vm2, %v1226_v54, %v1228_v44  ;;  %v5077_v8 = vpack.c.bf16 %v4780_v20, %v4772_v17  ;;  %v4345_v20 = vld [vmem:[%s5894_s4 + $0x1f0] sm:$0xff]  }
 0x127   : > { %v1255_v31 = vsel %vm1196_vm2, %v1175_v9, %v1197_v53  ;;  %v5056_v41 = vsel %vm1196_vm2, %v1232_v62, %v1175_v9  ;;  %v5061_v47 = vsel %vm1336_vm4, %v1372_v50, %v1374_v11  ;;  %v5066_v33 = vsel %vm1336_vm4, %v1374_v11, %v1337_v30  ;;  %4110 = vmatmul.mubr.msk.bf16.gmra.mxu0 %vm5034_vm11, %v5025_v13 }
 0x128   : > { %4126 = vmatpush3.bf16.msra.mxu0 %v4337_v42  ;;  %v3317_v53 = vpack.c.bf16 %v1199_v22, %v1255_v31  ;;  %v1231_v3 = vsel %vm1196_vm2, %v1228_v44, %v1230_v10  ;;  %v932_v30 = vand.u32 15, %v728_v43  ;;  %v5085_v9 = vsel %vm1196_vm2, %v1230_v10, %v1232_v62  ;;  %4129 = vmatprep.mubr.msk.bf16.mxu0 %vm4817_vm8, %v4821_v52  ;;  %v4344_v43 = vld [vmem:[%s5894_s4 + $0xf0] sm:$0xff]   ;;  %v4349_v52 = vld [vmem:[%s5894_s4 + $0x128] sm:$0xff]   ;;  %v4342_v22 = vld [vmem:[%s5894_s4 + $0x1b8] sm:$0xff]  }
 0x129   : > { %4127 = vmatprep.subr.bf16.mxu0 %v4340_v15  ;;  %v5082_v42 = vpack.c.bf16 %v1231_v3, %v1229_v23  ;;  %v3622_v44 = vpack.c.bf16 %v5056_v41, %v5085_v9  ;;  %v3654_v11 = vpack.c.bf16 %v5066_v33, %v5061_v47  ;;  %v1200_v62 = vrot.slane %v4772_v17, 7  ;;  %v4350_v31 = vld [vmem:[%s5894_s4 + $0xe8] sm:$0xff]   ;;  %v4375_v23 = vld [vmem:[%s5894_s4 + $0x218] sm:$0xff]  }
 0x12a   : > { %3318 = vmatmul.mubr.msk.bf16.vlgmr.msra.gmra.mxu1 %vm5048_vm12, %v3317_v53  ;;  %vm3755_vm8 = vcmp.ne.s32.totalorder %v932_v30, 0  ;;  %v730_v10 = vadd.s32 32, %v4755_v1  ;;  %v5138_v53 = vpack.c.bf16 %v4814_v49, %v4797_v35  ;;  %v4347_v3 = vld [vmem:[%s5894_s4 + $0x1e8] sm:$0xff]   ;;  %v732_v30 = vadd.s32 48, %v4755_v1 }
 0x12b   : > { %3870 = vmatpush3.bf16.msra.mxu1 %v4339_v26  ;;  %1720 = vmatprep.mubr.bf16.mxu1 %v5077_v8  ;;  %v1201_v17 = vsel %vm1196_vm2, %v1198_v34, %v1200_v62  ;;  %vm5117_vm14 = vmpackc.low %vm4481_vm6, %vm3755_vm8  ;;  %v1206_v26 = vrot.slane %v4814_v49, 7  ;;  %v4356_v49 = vld [vmem:[%s5894_s4 + $0xe0] sm:$0xff]  }
 0x12c   : > { %4128 = vmatpush3.bf16.msra.mxu0 %v4340_v15  ;;  %3871 = vmatprep.subr.bf16.mxu1 %v4343_v60  ;;  %v1203_v15 = vsel %vm1196_vm2, %v1200_v62, %v1202_v51  ;;  %v946_v34 = vand.u32 15, %v730_v10  ;;  %v4346_v60 = vld [vmem:[%s5894_s4 + $0x1b0] sm:$0xff]  }
 0x12d   : > { %3949 = vmatprep.subr.bf16.mxu0 %v4341_v19  ;;  %v5127_v25 = vpack.c.bf16 %v1203_v15, %v1201_v17  ;;  %v1204_v19 = vrot.slane %v4797_v35, 7  ;;  %v4348_v35 = vld [vmem:[%s5894_s4 + $0x1a8] sm:$0xff]   ;;  %v4362_v17 = vld [vmem:[%s5894_s4 + $0xd8] sm:$0xff]   ;;  %v960_v15 = vand.u32 15, %v732_v30  ;;  %v734_v30 = vadd.s32 64, %v4755_v1 }
 0x12e   : > { %vm3756_vm1 = vcmp.ne.s32.totalorder %v946_v34, 0  ;;  %v4352_v34 = vld [vmem:[%s5894_s4 + $0x1a0] sm:$0xff]  }
 0x12f   : > { %3872 = vmatpush3.bf16.msra.mxu1 %v4344_v43  ;;  %4130 = vmatmul.mubr.msk.bf16.vlgmr.msra.gmra.mxu0 %vm4848_vm10, %v4852_v7  ;;  %v4361_v43 = vld [vmem:[%s5894_s4 + $0x118] sm:$0xff]   ;;  %v1207_v62 = vsel %vm1196_vm2, %v1204_v19, %v1206_v26  ;;  %v1205_v10 = vsel %vm1196_vm2, %v1202_v51, %v1204_v19  ;;  %vm5167_vm5 = vmpackc.low %vm4481_vm6, %vm3756_vm1  ;;  %v4365_v51 = vld [vmem:[%s5894_s4 + $0x110] sm:$0xff]   ;;  %v1210_v19 = vrot.slane %v4832_v58, 7  ;;  %vm3757_vm7 = vcmp.ne.s32.totalorder %v960_v15, 0 }
 0x130   : > { %3873 = vmatprep.subr.bf16.mxu1 %v4349_v52  ;;  %4133 = vmatprep.mubr.msk.bf16.mxu0 %vm4885_vm13, %v4895_v37  ;;  %v4351_v52 = vld [vmem:[%s5894_s4 + $0x1e0] sm:$0xff]   ;;  %vm5219_vm12 = vmpackc.low %vm4481_vm6, %vm3757_vm7 }
 0x131   : > { %3950 = vmatpush3.bf16.msra.mxu0 %v4342_v22  ;;  %v4376_v22 = vld [vmem:[%s5894_s4 + $0x210] sm:$0xff]  }
 0x132   : > { %3322 = vmatmul.mubr.msk.bf16.gmra.mxu1 %vm5117_vm14, %v5127_v25  ;;  %3951 = vmatprep.subr.bf16.mxu0 %v4345_v20  ;;  %v5177_v20 = vpack.c.bf16 %v1207_v62, %v1205_v10 }
 0x133   : > { %1728 = vmatprep.mubr.bf16.mxu1 %v5138_v53  ;;  %3874 = vmatpush3.bf16.msra.mxu1 %v4350_v31  ;;  %v5187_v31 = vpack.c.bf16 %v4832_v58, %v4803_v40 }
 0x134   : > { %3875 = vmatprep.subr.bf16.mxu1 %v4355_v38  ;;  %v4353_v38 = vld [vmem:[%s5894_s4 + $0x1d8] sm:$0xff]  }
 0x135   : > { %3952 = vmatpush3.bf16.msra.mxu0 %v4346_v60  ;;  %v743_v60 = vadd.s32 136, %v4755_v1 }
 0x136   : > { %3953 = vmatprep.subr.bf16.mxu0 %v4347_v3  ;;  %v1208_v3 = vrot.slane %v4803_v40, 7  ;;  %v4354_v40 = vld [vmem:[%s5894_s4 + $0x198] sm:$0xff]  }
 0x137   : > { %3876 = vmatpush3.bf16.msra.mxu1 %v4356_v49  ;;  %4134 = vmatmul.mubr.msk.bf16.gmra.mxu0 %vm4920_vm15, %v4928_v61  ;;  %v4366_v49 = vld [vmem:[%s5894_s4 + $0xd0] sm:$0xff]   ;;  %v1037_v62 = vand.u32 15, %v743_v60  ;;  %v5240_v60 = vpack.c.bf16 %v4868_v16, %v4840_v0 }
 0x138   : > { %3877 = vmatprep.subr.bf16.mxu1 %v4361_v43  ;;  %4137 = vmatprep.mubr.msk.bf16.mxu0 %vm4958_vm3, %v4964_v24  ;;  %v4367_v43 = vld [vmem:[%s5894_s4 + $0x108] sm:$0xff]   ;;  %v1209_v58 = vsel %vm1196_vm2, %v1206_v26, %v1208_v3  ;;  %v1211_v10 = vsel %vm1196_vm2, %v1208_v3, %v1210_v19  ;;  %v4358_v3 = vld [vmem:[%s5894_s4 + $0x190] sm:$0xff]  }
 0x139   : > { %3954 = vmatpush3.bf16.msra.mxu0 %v4348_v35  ;;  %v4357_v35 = vld [vmem:[%s5894_s4 + $0x1d0] sm:$0xff]   ;;  %v4368_v26 = vld [vmem:[%s5894_s4 + $0xc8] sm:$0xff]   ;;  %v5229_v15 = vpack.c.bf16 %v1211_v10, %v1209_v58  ;;  %vm3770_vm8 = vcmp.ne.s32.totalorder %v1037_v62, 15  ;;  %v736_v58 = vadd.s32 80, %v4755_v1  ;;  %v4363_v62 = vld [vmem:[%s5894_s4 + $0x1c0] sm:$0xff]  }
 0x13a   : > { %3326 = vmatmul.mubr.msk.bf16.gmra.mxu1 %vm5167_vm5, %v5177_v20  ;;  %3955 = vmatprep.subr.bf16.mxu0 %v4351_v52  ;;  %v1370_v52 = vrot.slane %v5016_v4, 1  ;;  %vm5269_vm7 = vmpackc.low %vm3770_vm8, %vm4481_vm6 }
 0x13b   : > { %1736 = vmatprep.mubr.bf16.mxu1 %v5187_v31  ;;  %3878 = vmatpush3.bf16.msra.mxu1 %v4362_v17  ;;  %v5960_v36 = vsel %vm5269_vm7, 4294967295, %v5959_v36  ;;  %v3618_v17 = vpack.c.bf16 %v724_v46, %v723_v12 }
 0x13c   : > { %3879 = vmatprep.subr.bf16.mxu1 %v4365_v51  ;;  %v974_v51 = vand.u32 15, %v734_v30  ;;  %v1212_v30 = vrot.slane %v4840_v0, 7  ;;  %v5266_v0 = vld [vmem:[%s5894_s4 + $0x238] sm:$0xff]  }
 0x13d   : > { %3956 = vmatpush3.bf16.msra.mxu0 %v4352_v34  ;;  %v4369_v34 = vld [vmem:[%s5894_s4 + $0x100] sm:$0xff]  }
 0x13e   : > { %3957 = vmatprep.subr.bf16.mxu0 %v4353_v38  ;;  %v1214_v38 = vrot.slane %v4868_v16, 7  ;;  %v1371_v16 = vsel %vm1336_vm4, %v1368_v45, %v1370_v52  ;;  %vm3758_vm1 = vcmp.ne.s32.totalorder %v974_v51, 0  ;;  %v4360_v45 = vld [vmem:[%s5894_s4 + $0x188] sm:$0xff]   ;;  %v988_v51 = vand.u32 15, %v736_v58 }
 0x13f   : > { %3880 = vmatpush3.bf16.msra.mxu1 %v4366_v49  ;;  %4138 = vmatmul.mubr.msk.bf16.gmra.mxu0 %vm5002_vm9, %v5008_v55  ;;  %v4359_v49 = vld [vmem:[%s5894_s4 + $0x1c8] sm:$0xff]   ;;  %v1222_v58 = vrot.slane %v4930_v63, 7 }
 0x140   : > { %3881 = vmatprep.subr.bf16.mxu1 %v4367_v43  ;;  %4141 = vmatprep.mubr.msk.bf16.mxu0 %vm5034_vm11, %v5025_v13  ;;  %v1373_v43 = vsel %vm1336_vm4, %v1370_v52, %v1372_v50  ;;  %v1215_v50 = vsel %vm1196_vm2, %v1212_v30, %v1214_v38  ;;  %v1213_v52 = vsel %vm1196_vm2, %v1210_v19, %v1212_v30  ;;  %vm5284_vm4 = vmpackc.low %vm4481_vm6, %vm3758_vm1  ;;  %vm3759_vm8 = vcmp.ne.s32.totalorder %v988_v51, 0 }
 0x141   : > { %3958 = vmatpush3.bf16.msra.mxu0 %v4354_v40  ;;  %v4370_v40 = vld [vmem:[%s5894_s4 + $0xc0] sm:$0xff]   ;;  %v5297_v19 = vpack.c.bf16 %v4879_v27, %v4863_v14  ;;  %v738_v30 = vadd.s32 96, %v4755_v1  ;;  %vm5312_vm1 = vmpackc.low %vm4481_vm6, %vm3759_vm8 }
 0x142   : > { %3330 = vmatmul.mubr.msk.bf16.gmra.mxu1 %vm5219_vm12, %v5229_v15  ;;  %3959 = vmatprep.subr.bf16.mxu0 %v4357_v35  ;;  %v5277_v35 = vpack.c.bf16 %v1373_v43, %v1371_v16 }
 0x143   : > { %1744 = vmatprep.mubr.bf16.mxu1 %v5240_v60  ;;  %3882 = vmatpush3.bf16.msra.mxu1 %v4368_v26  ;;  %v5291_v26 = vpack.c.bf16 %v1215_v50, %v1213_v52  ;;  %v740_v50 = vadd.s32 112, %v4755_v1 }
 0x144   : > { %3883 = vmatprep.subr.bf16.mxu1 %v4369_v34  ;;  %v4364_v34 = vld [vmem:[%s5894_s4 + $0x180] sm:$0xff]  }
 0x145   : > { %3960 = vmatpush3.bf16.msra.mxu0 %v4358_v3  ;;  %v1216_v3 = vrot.slane %v4863_v14, 7 }
 0x146   : > { %3961 = vmatprep.subr.bf16.mxu0 %v4359_v49  ;;  %v1218_v49 = vrot.slane %v4879_v27, 7  ;;  %v1002_v27 = vand.u32 15, %v738_v30 }
 0x147   : > { %3884 = vmatpush3.bf16.msra.mxu1 %v4370_v40  ;;  %4142 = vmatmul.mubr.msk.bf16.gmra.mxu0 %vm5269_vm7, %v5277_v35  ;;  %v1217_v16 = vsel %vm1196_vm2, %v1214_v38, %v1216_v3  ;;  %v5325_v38 = vpack.c.bf16 %v4930_v63, %v4898_v39 }
 0x148   : > { %4145 = vmatprep.subr.bf16.mxu1 %v5266_v0  ;;  %2566 = vmatprep.mubr.bf16.mxu0 %v5138_v53  ;;  %v1219_v43 = vsel %vm1196_vm2, %v1216_v3, %v1218_v49  ;;  %vm3760_vm8 = vcmp.ne.s32.totalorder %v1002_v27, 0  ;;  %v1224_v3 = vrot.slane %v4924_v57, 7  ;;  %v4384_v27 = vld [vmem:[%s5895_s5 + $0x10] sm:$0xff]  }
 0x149   : > { %3962 = vmatpush3.bf16.msra.mxu0 %v4360_v45  ;;  %v5319_v14 = vpack.c.bf16 %v1219_v43, %v1217_v16  ;;  %v1220_v45 = vrot.slane %v4898_v39, 7  ;;  %vm5336_vm7 = vmpackc.low %vm4481_vm6, %vm3760_vm8  ;;  %v1016_v39 = vand.u32 15, %v740_v50 }
 0x14a   : > { %3334 = vmatmul.mubr.msk.bf16.gmra.mxu1 %vm5284_vm4, %v5291_v26  ;;  %3963 = vmatprep.subr.bf16.mxu0 %v4363_v62  ;;  %v1227_v30 = vsel %vm1196_vm2, %v1224_v3, %v1226_v54  ;;  %v4374_v54 = vld [vmem:[%s5894_s4 + $0x220] sm:$0xff]  }
 0x14b   : > { %1752 = vmatprep.mubr.bf16.mxu1 %v5297_v19  ;;  %v1223_v62 = vsel %vm1196_vm2, %v1220_v45, %v1222_v58  ;;  %v1221_v52 = vsel %vm1196_vm2, %v1218_v49, %v1220_v45  ;;  %vm3761_vm8 = vcmp.ne.s32.totalorder %v1016_v39, 0  ;;  %v1225_v49 = vsel %vm1196_vm2, %v1222_v58, %v1224_v3 }
 0x14c   : > { %v5343_v63 = vpack.c.bf16 %v1223_v62, %v1221_v52  ;;  %vm5360_vm11 = vmpackc.low %vm4481_vm6, %vm3761_vm8  ;;  %v3345_v43 = vpack.c.bf16 %v1227_v30, %v1225_v49  ;;  %v4385_v52 = vld [vmem:[%s5895_s5 + $0x8] sm:$0xff]   ;;  %v4386_v30 = vld [vmem:[%s5895_s5] sm:$0xff]  }
 0x14d   : > { %3964 = vmatpush3.bf16.msra.mxu0 %v4364_v34  ;;  %v5348_v34 = vpack.c.bf16 %v4926_v59, %v4924_v57  ;;  %v4372_v57 = vld [vmem:[%s5894_s4 + $0x230] sm:$0xff]   ;;  %v4373_v59 = vld [vmem:[%s5894_s4 + $0x228] sm:$0xff]  }
 0x150   : > { %3590 = vmatmul.mubr.msk.bf16.vlgmr.msra.gmra.mxu0 %vm5167_vm5, %v5177_v20 }
 0x151   : > { %2574 = vmatprep.mubr.bf16.mxu0 %v5187_v31 }
 0x152   : > { %3338 = vmatmul.mubr.msk.bf16.gmra.mxu1 %vm5312_vm1, %v5319_v14 }
 0x153   : > { %1760 = vmatprep.mubr.bf16.mxu1 %v5325_v38 }
 0x158   : > { %3594 = vmatmul.mubr.msk.bf16.gmra.mxu0 %vm5219_vm12, %v5229_v15 }
 0x159   : > { %2582 = vmatprep.mubr.bf16.mxu0 %v5240_v60 }
 0x15a   : > { %3342 = vmatmul.mubr.msk.bf16.gmra.mxu1 %vm5336_vm7, %v5343_v63 }
 0x15b   : > { %1768 = vmatprep.mubr.bf16.mxu1 %v5348_v34 }
 0x160   : > { %3598 = vmatmul.mubr.msk.bf16.gmra.mxu0 %vm5284_vm4, %v5291_v26 }
 0x161   : > { %2590 = vmatprep.mubr.bf16.mxu0 %v5297_v19 }
 0x162   : > { %3346 = vmatmul.mubr.msk.bf16.gmra.mxu1 %vm5360_vm11, %v3345_v43 }
 0x163   : > { %2131 = vmatprep.mubr.bf16.mxu1 %v5077_v8  ;;  %v742_v8 = vadd.s32 128, %v4755_v1 }
 0x168   : > { %3602 = vmatmul.mubr.msk.bf16.gmra.mxu0 %vm5312_vm1, %v5319_v14 }
 0x169   : > { %2598 = vmatprep.mubr.bf16.mxu0 %v5325_v38 }
 0x16a   : > { %3454 = vmatmul.mubr.msk.bf16.vlgmr.msra.gmra.mxu1 %vm5117_vm14, %v5127_v25  ;;  %v1030_v25 = vand.u32 15, %v742_v8  ;;  %vm3615_vm14 = vmneg %vm4936_vm0 }
 0x16b   : > { %4146 = vmatpush3.bf16.msra.mxu1 %v5266_v0  ;;  %2139 = vmatprep.mubr.bf16.mxu1 %v5138_v53  ;;  %v1476_v53 = vpack.c.bf16 %v5016_v4, %v4970_v28  ;;  %v4377_v28 = vld [vmem:[%s5894_s4 + $0x208] sm:$0xff]  }
 0x16c   : > { %4147 = vmatprep.subr.bf16.mxu1 %v4372_v57  ;;  %vm3769_vm2 = vcmp.ne.s32.totalorder %v1030_v25, 0 }
 0x16f   : > { %4148 = vmatpush3.bf16.msra.mxu1 %v4372_v57 }
 0x170   : > { %3606 = vmatmul.mubr.msk.bf16.gmra.mxu0 %vm5336_vm7, %v5343_v63  ;;  %4149 = vmatprep.subr.bf16.mxu1 %v4373_v59 }
 0x171   : > { %2606 = vmatprep.mubr.bf16.mxu0 %v5348_v34 }
 0x172   : > { %3458 = vmatmul.mubr.msk.bf16.gmra.mxu1 %vm5167_vm5, %v5177_v20  ;;  %v744_v20 = vadd.s32 144, %v4755_v1  ;;  %vm5419_vm5 = vmpackc.low %vm4481_vm6, %vm3769_vm2 }
 0x173   : > { %2147 = vmatprep.mubr.bf16.mxu1 %v5187_v31  ;;  %4150 = vmatpush3.bf16.msra.mxu1 %v4373_v59 }
 0x174   : > { %4151 = vmatprep.subr.bf16.mxu1 %v4374_v54  ;;  %v1044_v31 = vand.u32 15, %v744_v20 }
 0x176   : > { %vm3746_vm0 = vcmp.ne.s32.totalorder %v1044_v31, 0 }
 0x177   : > { %4152 = vmatpush3.bf16.msra.mxu1 %v4374_v54  ;;  %vm3621_vm8 = vmpackc.low %vm4481_vm6, %vm3746_vm0 }
 0x178   : > { %3610 = vmatmul.mubr.msk.bf16.gmra.mxu0 %vm5360_vm11, %v3345_v43  ;;  %4153 = vmatprep.subr.bf16.mxu1 %v4375_v23 }
 0x179   : > { %2614 = vmatprep.mubr.bf16.mxu0 %v1476_v53 }
 0x17a   : > { %3462 = vmatmul.mubr.msk.bf16.gmra.mxu1 %vm5219_vm12, %v5229_v15  ;;  %vm3617_vm12 = vmpackc.low %vm3615_vm14, %vm3615_vm14 }
 0x17b   : > { %2155 = vmatprep.mubr.bf16.mxu1 %v5240_v60  ;;  %4154 = vmatpush3.bf16.msra.mxu1 %v4375_v23 }
 0x17c   : > { %4155 = vmatprep.subr.bf16.mxu1 %v4376_v22 }
 0x17f   : > { %4156 = vmatpush3.bf16.msra.mxu1 %v4376_v22 }
 0x180   : > { %3614 = vmatmul.mubr.msk.bf16.gmra.mxu0 %vm5419_vm5, %v5082_v42  ;;  %4157 = vmatprep.subr.bf16.mxu1 %v4377_v28 }
 0x181   : > { %3619 = vmatprep.mubr.msk.bf16.mxu0 %vm3617_vm12, %v3618_v17 }
 0x182   : > { %3466 = vmatmul.mubr.msk.bf16.gmra.mxu1 %vm5284_vm4, %v5291_v26 }
 0x183   : > { %2163 = vmatprep.mubr.bf16.mxu1 %v5297_v19  ;;  %4158 = vmatpush3.bf16.msra.mxu1 %v4377_v28 }
 0x184   : > { %4159 = vmatprep.subr.bf16.mxu1 %v4378_v6 }
 0x187   : > { %4160 = vmatpush3.bf16.msra.mxu1 %v4378_v6 }
 0x188   : > { %3623 = vmatmul.mubr.msk.bf16.gmra.mxu0 %vm3621_vm8, %v3622_v44 }
 0x18a   : > { %3470 = vmatmul.mubr.msk.bf16.gmra.mxu1 %vm5312_vm1, %v5319_v14 }
 0x18b   : > { %2171 = vmatprep.mubr.bf16.mxu1 %v5325_v38 }
 0x192   : > { %3474 = vmatmul.mubr.msk.bf16.gmra.mxu1 %vm5336_vm7, %v5343_v63 }
 0x193   : > { %2179 = vmatprep.mubr.bf16.mxu1 %v5348_v34 }
 0x19a   : > { %3478 = vmatmul.mubr.msk.bf16.gmra.mxu1 %vm5360_vm11, %v3345_v43 }
 0x19b   : > { %2187 = vmatprep.mubr.bf16.mxu1 %v1476_v53 }
 0x1a2   : > { %3482 = vmatmul.mubr.msk.bf16.gmra.mxu1 %vm5419_vm5, %v5082_v42  ;;  %v4382_v42 = vld [vmem:[%s5895_s5 + $0x20] sm:$0xff]  }
 0x1a3   : > { %4161 = vmatprep.mubr.msk.bf16.mxu1 %vm4848_vm10, %v4852_v7  ;;  %vm5971_vm10 = vnez %v5950_v21 }
 0x1aa   : > { %4162 = vmatmul.mubr.msk.bf16.vlgmr.msra.gmra.mxu1 %vm4885_vm13, %v4895_v37  ;;  %vm5972_vm13 = vnez %v5960_v36  ;;  %v4379_v37 = vld [vmem:[%s5895_s5 + $0x38] sm:$0xff]  }
 0x1ab   : > { %4165 = vmatprep.mubr.msk.bf16.mxu1 %vm4920_vm15, %v4928_v61  ;;  %vm3747_vm15 = vcmp.ne.s32.totalorder %v1051_v5, 15  ;;  %4177 = vmatprep.subr.bf16.mxu0 %v4379_v37  ;;  %v4383_v36 = vld [vmem:[%s5895_s5 + $0x18] sm:$0xff]  }
 0x1ac   : > { %vm3653_vm11 = vmpackc.low %vm3747_vm15, %vm4481_vm6  ;;  %4209 = vmatprep.subr.bf16.mxu1 %v4379_v37  ;;  %4178 = vmatpush3.bf16.msra.mxu0 %v4379_v37 }
 0x1ad   : > { %4217 = vmatpush3.bf16.msra.mxu1 %v4379_v37  ;;  %4179 = vmatprep.subr.bf16.mxu0 %v4380_v18 }
 0x1ae   : > { %4210 = vmatprep.subr.bf16.mxu1 %v4380_v18 }
 0x1b0   : > { %4180 = vmatpush3.bf16.msra.mxu0 %v4380_v18 }
 0x1b1   : > { %4218 = vmatpush3.bf16.msra.mxu1 %v4380_v18 }
 0x1b2   : > { %4166 = vmatmul.mubr.msk.bf16.gmra.mxu1 %vm4958_vm3, %v4964_v24 }
 0x1b3   : > { %4169 = vmatprep.mubr.msk.bf16.mxu1 %vm5002_vm9, %v5008_v55  ;;  %v4381_v55 = vld [vmem:[%s5895_s5 + $0x28] sm:$0xff]  }
 0x1b4   : > { %4181 = vmatprep.subr.bf16.mxu0 %v4381_v55  ;;  %4211 = vmatprep.subr.bf16.mxu1 %v4381_v55 }
 0x1b5   : > { %4182 = vmatpush3.bf16.msra.mxu0 %v4381_v55  ;;  %4219 = vmatpush3.bf16.msra.mxu1 %v4381_v55 }
 0x1b6   : > { %4183 = vmatprep.subr.bf16.mxu0 %v4382_v42  ;;  %4212 = vmatprep.subr.bf16.mxu1 %v4382_v42 }
 0x1b9   : > { %4184 = vmatpush3.bf16.msra.mxu0 %v4382_v42  ;;  %4220 = vmatpush3.bf16.msra.mxu1 %v4382_v42 }
 0x1ba   : > { %4170 = vmatmul.mubr.msk.bf16.gmra.mxu1 %vm5971_vm10, %v5025_v13  ;;  %4185 = vmatprep.subr.bf16.mxu0 %v4383_v36 }
 0x1bb   : > { %4173 = vmatprep.mubr.msk.bf16.mxu1 %vm5972_vm13, %v5277_v35  ;;  %4213 = vmatprep.subr.bf16.mxu1 %v4383_v36 }
 0x1bd   : > { %4186 = vmatpush3.bf16.msra.mxu0 %v4383_v36  ;;  %4221 = vmatpush3.bf16.msra.mxu1 %v4383_v36 }
 0x1be   : > { %4187 = vmatprep.subr.bf16.mxu0 %v4384_v27  ;;  %4214 = vmatprep.subr.bf16.mxu1 %v4384_v27 }
 0x1c1   : > { %4188 = vmatpush3.bf16.msra.mxu0 %v4384_v27  ;;  %4222 = vmatpush3.bf16.msra.mxu1 %v4384_v27 }
 0x1c2   : > { %4174 = vmatmul.mubr.msk.bf16.gmra.mxu1 %vm3653_vm11, %v3654_v11  ;;  %4189 = vmatprep.subr.bf16.mxu0 %v4385_v52 }
 0x1c3   : > { %4215 = vmatprep.subr.bf16.mxu1 %v4385_v52 }
 0x1c5   : > { %4190 = vmatpush3.bf16.msra.mxu0 %v4385_v52  ;;  %4223 = vmatpush3.bf16.msra.mxu1 %v4385_v52 }
 0x1c6   : > { %4191 = vmatprep.subr.bf16.mxu0 %v4386_v30  ;;  %4216 = vmatprep.subr.bf16.mxu1 %v4386_v30 }
 0x1c9   : > { %4192 = vmatpush3.bf16.msra.mxu0 %v4386_v30  ;;  %4224 = vmatpush3.bf16.msra.mxu1 %v4386_v30 }
 0x1cf   : > { %v5480_v7 = vpop.f32.mrf.mxu0 }
 0x1d1   : > { %v1811_v32 = vpop.f32.mrf.mxu0 }
 0x1d3   : > { %v5482_v1 = vpop.f32.mrf.mxu0 }
 0x1d5   : > { %v1814_v56 = vpop.f32.mrf.mxu0 }
 0x1d7   : > { %v5487_v61 = vpop.f32.mrf.mxu0 }
 0x1d9   : > { %v5489_v12 = vpop.f32.mrf.mxu0 }
 0x1db   : > { %v5494_v24 = vpop.f32.mrf.mxu0 }
 0x1dd   : > { %v5496_v29 = vpop.f32.mrf.mxu0 }
 0x1df   : > { %v5498_v46 = vpop.f32.mrf.mxu0 }
 0x1e1   : > { %v5500_v48 = vpop.f32.mrf.mxu0 }
 0x1e3   : > { %v5505_v13 = vpop.f32.mrf.mxu0 }
 0x1e5   : > { %v5507_v21 = vpop.f32.mrf.mxu0 }
 0x1e7   : > { %v5509_v41 = vpop.f32.mrf.mxu0 }
 0x1e9   : > { %v5511_v33 = vpop.f32.mrf.mxu0 }
 0x1ea   : > { %v3805_v47 = vpop.f32.mrf.mxu1 }
 0x1eb   : > { %v5516_v44 = vpop.f32.mrf.mxu0 }
 0x1ec   : > { %v3806_v9 = vpop.f32.mrf.mxu1 }
 0x1ed   : > { %v3807_v11 = vadd.f32 %v3806_v9, %v3805_v47  ;;  %v5520_v0 = vpop.f32.mrf.mxu0 }
 0x1ee   : > { %v3808_v15 = vpop.f32.mrf.mxu1 }
 0x1ef   : > { %v5518_v60 = vadd.f32 %v3807_v11, %v1811_v32  ;;  %v5525_v10 = vpop.f32.mrf.mxu0 }
 0x1f0   : > { %v3809_v35 = vpop.f32.mrf.mxu1 }
 0x1f1   : > { %v3810_v26 = vadd.f32 %v3809_v35, %v3808_v15  ;;  %v5529_v40 = vpop.f32.mrf.mxu0 }
 0x1f2   : > { %v3811_v14 = vpop.f32.mrf.mxu1 }
 0x1f3   : > { %v5527_v19 = vadd.f32 %v3810_v26, %v1814_v56  ;;  %v5534_v58 = vpop.f32.mrf.mxu0 }
 0x1f4   : > { %v3812_v38 = vpop.f32.mrf.mxu1 }
 0x1f5   : > { %v3813_v45 = vadd.f32 %v3812_v38, %v3811_v14  ;;  %v5536_v50 = vpop.f32.mrf.mxu0 }
 0x1f6   : > { %v3814_v62 = vpop.f32.mrf.mxu1 }
 0x1f7   : > { %v5542_v51 = vadd.f32 %v5480_v7, %v3813_v45  ;;  %v5544_v63 = vpop.f32.mrf.mxu0 }
 0x1f8   : > { %v3815_v39 = vpop.f32.mrf.mxu1 }
 0x1f9   : > { %v3816_v34 = vadd.f32 %v3815_v39, %v3814_v62  ;;  %v5546_v3 = vpop.f32.mrf.mxu0 }
 0x1fa   : > { %v3817_v49 = vpop.f32.mrf.mxu1 }
 0x1fb   : > { %v5552_v16 = vadd.f32 %v5482_v1, %v3816_v34  ;;  %v5554_v43 = vpop.f32.mrf.mxu0 }
 0x1fc   : > { %v3818_v57 = vpop.f32.mrf.mxu1 }
 0x1fd   : > { %v3819_v59 = vadd.f32 %v3818_v57, %v3817_v49  ;;  %v5556_v54 = vpop.f32.mrf.mxu0 }
 0x1fe   : > { %v3820_v8 = vpop.f32.mrf.mxu1 }
 0x1ff   : > { %v5559_v23 = vadd.f32 %v3819_v59, %v5489_v12  ;;  %v5561_v25 = vpop.f32.mrf.mxu0 }
 0x200   : > { %5973 = vst [vmem:[#allocation14_spill] sm:$0xff] %v5561_v25  ;;  %v3821_v53 = vpop.f32.mrf.mxu1 }
 0x201   : > { %v3822_v22 = vadd.f32 %v3821_v53, %v3820_v8  ;;  %v5563_v20 = vpop.f32.mrf.mxu0 }
 0x202   : > { %v3823_v28 = vpop.f32.mrf.mxu1 }
 0x203   : > { %v5566_v4 = vadd.f32 %v3822_v22, %v5496_v29  ;;  %v5568_v31 = vpop.f32.mrf.mxu0 }
 0x204   : > { %5974 = vst [vmem:[#allocation15_spill] sm:$0xff] %v5568_v31  ;;  %v3824_v17 = vpop.f32.mrf.mxu1 }
 0x205   : > { %v3825_v6 = vadd.f32 %v3824_v17, %v3823_v28  ;;  %v5570_v2 = vpop.f32.mrf.mxu0 }
 0x206   : > { %5975 = vst [vmem:[#allocation16_spill] sm:$0xff] %v5570_v2  ;;  %v3826_v5 = vpop.f32.mrf.mxu1 }
 0x207   : > { %v5573_v7 = vadd.f32 %v5487_v61, %v3825_v6  ;;  %v5575_v32 = vpop.f32.mrf.mxu0 }
 0x208   : > { %5976 = vst [vmem:[#allocation17_spill] sm:$0xff] %v5575_v32  ;;  %v3827_v1 = vpop.f32.mrf.mxu1 }
 0x209   : > { %v3828_v37 = vadd.f32 %v3827_v1, %v3826_v5  ;;  %v5577_v56 = vpop.f32.mrf.mxu0 }
 0x20a   : > { %5977 = vst [vmem:[#allocation18_spill] sm:$0xff] %v5577_v56  ;;  %v3829_v12 = vpop.f32.mrf.mxu1 }
 0x20b   : > { %v5580_v18 = vadd.f32 %v5494_v24, %v3828_v37  ;;  %v5582_v29 = vpop.f32.mrf.mxu0 }
 0x20c   : > { %5978 = vst [vmem:[#allocation19_spill] sm:$0xff] %v5582_v29  ;;  %v3830_v55 = vpop.f32.mrf.mxu1 }
 0x20d   : > { %v3831_v47 = vadd.f32 %v3830_v55, %v3829_v12  ;;  %v5584_v42 = vpop.f32.mrf.mxu0 }
 0x20e   : > { %5979 = vst [vmem:[#allocation20_spill] sm:$0xff] %v5584_v42  ;;  %v3832_v9 = vpop.f32.mrf.mxu1 }
 0x20f   : > { %v5587_v61 = vadd.f32 %v3831_v47, %v5500_v48 }
 0x210   : > { %v5589_v11 = vpop.f32.mrf.mxu0  ;;  %v3833_v15 = vpop.f32.mrf.mxu1 }
 0x211   : > { %5980 = vst [vmem:[#allocation21_spill] sm:$0xff] %v5587_v61  ;;  %v3834_v36 = vadd.f32 %v3833_v15, %v3832_v9 }
 0x212   : > { %v5591_v35 = vpop.f32.mrf.mxu0  ;;  %v3835_v26 = vpop.f32.mrf.mxu1 }
 0x213   : > { %v5594_v24 = vadd.f32 %v3834_v36, %v5507_v21 }
 0x214   : > { %v5596_v14 = vpop.f32.mrf.mxu0  ;;  %v3836_v27 = vpop.f32.mrf.mxu1 }
 0x215   : > { %5981 = vst [vmem:[#allocation22_spill] sm:$0xff] %v5594_v24  ;;  %v3837_v38 = vadd.f32 %v3836_v27, %v3835_v26 }
 0x216   : > { %v5598_v45 = vpop.f32.mrf.mxu0  ;;  %v3838_v62 = vpop.f32.mrf.mxu1 }
 0x217   : > { %v5601_v48 = vadd.f32 %v5498_v46, %v3837_v38 }
 0x218   : > { %v5603_v52 = vpop.f32.mrf.mxu0  ;;  %v3839_v39 = vpop.f32.mrf.mxu1 }
 0x219   : > { %5982 = vst [vmem:[#allocation23_spill] sm:$0xff] %v5601_v48  ;;  %v3840_v34 = vadd.f32 %v3839_v39, %v3838_v62 }
 0x21a   : > { %v5605_v49 = vpop.f32.mrf.mxu0  ;;  %v3841_v30 = vpop.f32.mrf.mxu1 }
 0x21b   : > { %v5608_v21 = vadd.f32 %v5505_v13, %v3840_v34 }
 0x21c   : > { %v3842_v57 = vpop.f32.mrf.mxu1  ;;  %v5610_v59 = vpop.f32.mrf.mxu0 }
 0x21d   : > { %5983 = vst [vmem:[#allocation24_spill] sm:$0xff] %v5608_v21  ;;  %v3843_v8 = vadd.f32 %v3842_v57, %v3841_v30 }
 0x21e   : > { %v3844_v53 = vpop.f32.mrf.mxu1  ;;  %v5615_v28 = vpop.f32.mrf.mxu0 }
 0x21f   : > { %v5613_v22 = vadd.f32 %v3843_v8, %v5511_v33 }
 0x220   : > { %v3845_v46 = vpop.f32.mrf.mxu1  ;;  %v5620_v37 = vpop.f32.mrf.mxu0 }
 0x221   : > { %5984 = vst [vmem:[#allocation25_spill] sm:$0xff] %v5613_v22  ;;  %v3846_v17 = vadd.f32 %v3845_v46, %v3844_v53 }
 0x222   : > { %v3847_v6 = vpop.f32.mrf.mxu1  ;;  %v5625_v9 = vpop.f32.mrf.mxu0 }
 0x223   : > { %v5618_v5 = vadd.f32 %v3846_v17, %v5520_v0 }
 0x224   : > { %v3848_v1 = vpop.f32.mrf.mxu1  ;;  %v5630_v27 = vpop.f32.mrf.mxu0 }
 0x225   : > { %5985 = vst [vmem:[#allocation26_spill] sm:$0xff] %v5618_v5  ;;  %v3849_v13 = vadd.f32 %v3848_v1, %v3847_v6 }
 0x226   : > { %v3850_v12 = vpop.f32.mrf.mxu1  ;;  %v5633_v34 = vpop.f32.mrf.mxu0 }
 0x227   : > { %v5623_v55 = vadd.f32 %v5509_v41, %v3849_v13 }
 0x228   : > { %v3851_v47 = vpop.f32.mrf.mxu1  ;;  %v5638_v8 = vpop.f32.mrf.mxu0 }
 0x229   : > { %5986 = vst [vmem:[#allocation27_spill] sm:$0xff] %v5623_v55  ;;  %v3852_v33 = vadd.f32 %v3851_v47, %v3850_v12 }
 0x22a   : > { %v3885_v15 = vpop.f32.mrf.mxu1  ;;  %v5640_v46 = vpop.f32.mrf.mxu0 }
 0x22b   : > { %v5628_v36 = vadd.f32 %v5516_v44, %v3852_v33 }
 0x22c   : > { %v3886_v26 = vpop.f32.mrf.mxu1 }
 0x22d   : > { %5987 = vst [vmem:[#allocation28_spill] sm:$0xff] %v5628_v36  ;;  %v3887_v0 = vadd.f32 %v3886_v26, %v3885_v15 }
 0x22e   : > { %v3888_v38 = vpop.f32.mrf.mxu1 }
 0x22f   : > { %v2231_v62 = vadd.f32 %v3887_v0, %v5529_v40  ;;  %v3986_v40 = vpop.f32.mrf.mxu0 }
 0x230   : > { %v3889_v39 = vpop.f32.mrf.mxu1 }
 0x231   : > { %v5636_v41 = vadd.f32 %v2231_v62, %v5518_v60  ;;  %v3987_v33 = vpop.f32.mrf.mxu0 }
 0x232   : > { %v3891_v30 = vpop.f32.mrf.mxu1 }
 0x233   : > { %v3989_v0 = vpop.f32.mrf.mxu0 }
 0x234   : > { %v3892_v57 = vpop.f32.mrf.mxu1 }
 0x235   : > { %v3990_v36 = vpop.f32.mrf.mxu0  ;;  %v3893_v31 = vadd.f32 %v3892_v57, %v3891_v30  ;;  %v3967_v30 = vadd.f32 %v5591_v35, %v5589_v11  ;;  %v5700_v11 = vld [vmem:[%s5897_s7] ss:$0 sm:$0xff]  ;;  %v3982_v35 = vadd.f32 %v5633_v34, %v5630_v27 }
 0x236   : > { %v3894_v53 = vpop.f32.mrf.mxu1 }
 0x238   : > { %v3895_v44 = vpop.f32.mrf.mxu1 }
 0x239   : > { %v3896_v17 = vadd.f32 %v3895_v44, %v3894_v53  ;;  %v5650_v44 = vpop.f32.mrf.mxu0 }
 0x23a   : > { %v3897_v6 = vpop.f32.mrf.mxu1  ;;  %5988 = vst [vmem:[#allocation29_spill] sm:$0xff] %v5650_v44 }
 0x23b   : > { %v2242_v1 = vadd.f32 %v5534_v58, %v3896_v17 }
 0x23c   : > { %v3898_v13 = vpop.f32.mrf.mxu1 }
 0x23d   : > { %v5644_v12 = vadd.f32 %v2242_v1, %v5552_v16  ;;  %v5656_v16 = vpop.f32.mrf.mxu0 }
 0x23e   : > { %v3900_v47 = vpop.f32.mrf.mxu1  ;;  %5991 = vst [vmem:[#allocation32_spill] sm:$0xff] %v5656_v16 }
 0x23f   : > { %v5658_v29 = vpop.f32.mrf.mxu0 }
 0x240   : > { %v3901_v60 = vpop.f32.mrf.mxu1 }
 0x241   : > { %v5660_v56 = vpop.f32.mrf.mxu0 }
 0x242   : > { %v3903_v15 = vpop.f32.mrf.mxu1 }
 0x243   : > { %v5666_v2 = vpop.f32.mrf.mxu0 }
 0x244   : > { %v3904_v26 = vpop.f32.mrf.mxu1  ;;  %5994 = vst [vmem:[#allocation35_spill] sm:$0xff] %v5666_v2  ;;  %v3890_v2 = vadd.f32 %v3889_v39, %v3888_v38  ;;  %v3899_v38 = vadd.f32 %v3898_v13, %v3897_v6  ;;  %v3902_v39 = vadd.f32 %v3901_v60, %v3900_v47 }
 0x245   : > { %v5672_v44 = vpop.f32.mrf.mxu0 }
 0x246   : > { %v3906_v62 = vpop.f32.mrf.mxu1  ;;  %5997 = vst [vmem:[#allocation38_spill] sm:$0xff] %v5672_v44  ;;  %v2247_v47 = vadd.f32 %v3899_v38, %v5546_v3  ;;  %v2250_v27 = vadd.f32 %v3902_v39, %v5556_v54  ;;  %v6007_v38 = vld [vmem:[#allocation29_spill] sm:$0xff]  ;;  %v6008_v39 = vld [vmem:[#allocation32_spill] sm:$0xff] }
 0x248   : > { %v3907_v5 = vpop.f32.mrf.mxu1 }
 0x24a   : > { %v5646_v22 = vpop.f32.mrf.mxu1 }
 0x24c   : > { %v5648_v53 = vpop.f32.mrf.mxu1 }
 0x24e   : > { %v5652_v58 = vpop.f32.mrf.mxu1 }
 0x24f   : > { %5989 = vst [vmem:[#allocation30_spill] sm:$0xff] %v5652_v58  ;;  %v5678_v58 = vpop.f32.mrf.mxu0 }
 0x250   : > { %v5654_v17 = vpop.f32.mrf.mxu1  ;;  %6000 = vst [vmem:[#allocation41_spill] sm:$0xff] %v5678_v58  ;;  %v3905_v58 = vadd.f32 %v3904_v26, %v3903_v15 }
 0x251   : > { %5990 = vst [vmem:[#allocation31_spill] sm:$0xff] %v5654_v17 }
 0x252   : > { %v3915_v1 = vpop.f32.mrf.mxu1 }
 0x254   : > { %v3916_v42 = vpop.f32.mrf.mxu1 }
 0x256   : > { %v3918_v55 = vpop.f32.mrf.mxu1 }
 0x258   : > { %v3919_v24 = vpop.f32.mrf.mxu1 }
 0x25a   : > { %v5662_v32 = vpop.f32.mrf.mxu1 }
 0x25b   : > { %5992 = vst [vmem:[#allocation33_spill] sm:$0xff] %v5662_v32  ;;  %v2239_v32 = vadd.f32 %v5525_v10, %v3893_v31  ;;  %v3976_v10 = vadd.f32 %v5615_v28, %v5610_v59  ;;  %v2234_v31 = vadd.f32 %v3890_v2, %v5536_v50  ;;  %v3985_v59 = vadd.f32 %v5640_v46, %v5638_v8 }
 0x25c   : > { %v5664_v21 = vpop.f32.mrf.mxu1  ;;  %v3988_v28 = vadd.f32 %v3987_v33, %v3986_v40  ;;  %v3917_v33 = vadd.f32 %v3916_v42, %v3915_v1 }
 0x25d   : > { %5993 = vst [vmem:[#allocation34_spill] sm:$0xff] %v5664_v21  ;;  %v2295_v57 = vadd.f32 %v2239_v32, %v5542_v51  ;;  %v3970_v32 = vadd.f32 %v5598_v45, %v5596_v14 }
 0x25e   : > { %v5668_v61 = vpop.f32.mrf.mxu1 }
 0x25f   : > { %5995 = vst [vmem:[#allocation36_spill] sm:$0xff] %v5668_v61  ;;  %v3973_v61 = vadd.f32 %v5605_v49, %v5603_v52 }
 0x260   : > { %v5670_v48 = vpop.f32.mrf.mxu1 }
 0x261   : > { %5996 = vst [vmem:[#allocation37_spill] sm:$0xff] %v5670_v48  ;;  %v5687_v48 = vpop.f32.mrf.mxu0 }
 0x262   : > { %v5674_v16 = vpop.f32.mrf.mxu1  ;;  %6002 = vst [vmem:[#allocation43_spill] sm:$0xff] %v5687_v48  ;;  %v3908_v48 = vadd.f32 %v3907_v5, %v3906_v62  ;;  %v2255_v5 = vadd.f32 %v5544_v63, %v3905_v58 }
 0x263   : > { %5998 = vst [vmem:[#allocation39_spill] sm:$0xff] %v5674_v16 }
 0x264   : > { %v5676_v17 = vpop.f32.mrf.mxu1  ;;  %v2258_v34 = vadd.f32 %v5554_v43, %v3908_v48 }
 0x265   : > { %5999 = vst [vmem:[#allocation40_spill] sm:$0xff] %v5676_v17 }
 0x266   : > { %v5680_v25 = vpop.f32.mrf.mxu1 }
 0x268   : > { %v5683_v21 = vpop.f32.mrf.mxu1 }
 0x269   : > { %6001 = vst [vmem:[#allocation42_spill] sm:$0xff] %v5683_v21  ;;  %v5695_v21 = vpop.f32.mrf.mxu0 }
 0x26a   : > { %v4163_v44 = vpop.f32.mrf.mxu1 }
 0x26b   : > { %v2674_v17 = vadd.f32 %v4163_v44, %v3973_v61  ;;  %v3979_v61 = vadd.f32 %v5625_v9, %v5620_v37  ;;  %v5712_v13 = vpop.f32.mrf.mxu0  ;;  %v2294_v37 = vadd.f32 %v2234_v31, %v5527_v19  ;;  %v3920_v19 = vadd.f32 %v3919_v24, %v3918_v55 }
 0x26c   : > { %v2665_v16 = vpop.f32.mrf.mxu1  ;;  %v2297_v44 = vadd.f32 %v2247_v47, %v5559_v23  ;;  %v6006_v23 = vld [vmem:[#allocation15_spill] sm:$0xff] }
 0x26d   : > { %v2730_v52 = vadd.f32 %v2674_v17, %v2295_v57  ;;  %v2666_v49 = vadd.f32 %v3967_v30, %v2665_v16  ;;  %v4007_v3 = vpop.f32.mrf.mxu0  ;;  %v6003_v17 = vld [vmem:[#allocation14_spill] sm:$0xff] }
 0x26e   : > { %v4164_v51 = vpop.f32.mrf.mxu1  ;;  %v2271_v16 = vadd.f32 %v6003_v17, %v3917_v33 }
 0x26f   : > { %v2728_v50 = vadd.f32 %v2666_v49, %v5636_v41  ;;  %v2677_v2 = vadd.f32 %v4164_v51, %v3976_v10  ;;  %v2785_v14 = vadd.f32 %v5700_v11, %v2730_v52  ;;  %v3991_v41 = vadd.f32 %v3990_v36, %v3989_v0  ;;  %v4008_v10 = vpop.f32.mrf.mxu0 }
 0x270   : > { %v2668_v6 = vpop.f32.mrf.mxu1  ;;  %v2299_v36 = vadd.f32 %v2255_v5, %v5573_v7  ;;  %v3997_v0 = vadd.f32 %v5660_v56, %v5658_v29  ;;  %v2300_v7 = vadd.f32 %v2258_v34, %v5580_v18  ;;  %v6004_v56 = vld [vmem:[#allocation30_spill] sm:$0xff]  ;;  %v6005_v29 = vld [vmem:[#allocation31_spill] sm:$0xff]  ;;  %v2274_v52 = vadd.f32 %v6006_v23, %v3920_v19  ;;  %v6010_v18 = vld [vmem:[#allocation40_spill] sm:$0xff] }
 0x271   : > { %v2731_v45 = vadd.f32 %v2677_v2, %v5644_v12  ;;  %v2669_v9 = vadd.f32 %v3970_v32, %v2668_v6  ;;  %v2783_v63 = vadd.f32 %v5700_v11, %v2728_v50  ;;  %v3911_v12 = vadd.f32 %v5648_v53, %v5646_v22  ;;  %v6009_v32 = vld [vmem:[#allocation39_spill] sm:$0xff]  ;;  %v6013_v6 = vld [vmem:[#allocation33_spill] sm:$0xff] }
 0x272   : > { %v4167_v8 = vpop.f32.mrf.mxu1  ;;  %v2801_v26 = vmax.f32 %v2785_v14, 0.0  ;;  %v2298_v22 = vadd.f32 %v2250_v27, %v5566_v4  ;;  %v3914_v31 = vadd.f32 %v6005_v29, %v6004_v56  ;;  %v3994_v51 = vadd.f32 %v6008_v39, %v6007_v38  ;;  %v6014_v14 = vld [vmem:[#allocation34_spill] sm:$0xff]  ;;  %v6015_v27 = vld [vmem:[#allocation23_spill] sm:$0xff] }
 0x273   : > { %v2786_v46 = vadd.f32 %v5700_v11, %v2731_v45  ;;  %v2729_v40 = vadd.f32 %v2669_v9, %v2294_v37  ;;  %v2690_v60 = vadd.f32 %v4167_v8, %v3985_v59  ;;  %v2799_v42 = vmax.f32 %v2783_v63, 0.0  ;;  %v6011_v59 = vld [vmem:[#allocation35_spill] sm:$0xff]  ;;  %v6016_v8 = vld [vmem:[#allocation21_spill] sm:$0xff] }
 0x274   : > { %v2681_v15 = vpop.f32.mrf.mxu1  ;;  %v2263_v53 = vadd.f32 %v3911_v12, %v5563_v20  ;;  %v3923_v45 = vadd.f32 %v6014_v14, %v6013_v6  ;;  %v2303_v34 = vadd.f32 %v2271_v16, %v6015_v27  ;;  %v6027_v39 = vld [vmem:[#allocation27_spill] sm:$0xff]  ;;  %v6030_v6 = vld [vmem:[#allocation25_spill] sm:$0xff]  ;;  %v4006_v27 = vadd.f32 %v5712_v13, %v5695_v21 }
 0x275   : > { %v2802_v54 = vmax.f32 %v2786_v46, 0.0  ;;  %v2784_v43 = vadd.f32 %v5700_v11, %v2729_v40  ;;  %v2682_v48 = vadd.f32 %v3979_v61, %v2681_v15  ;;  %v2734_v62 = vadd.f32 %v2690_v60, %v2299_v36  ;;  %v4010_v40 = vpop.f32.mrf.mxu0  ;;  %v6017_v60 = vld [vmem:[#allocation16_spill] sm:$0xff] }
 0x276   : > { %v4168_v58 = vpop.f32.mrf.mxu1  ;;  %v3929_v61 = vadd.f32 %v6010_v18, %v6009_v32  ;;  %v2301_v63 = vadd.f32 %v2263_v53, %v6016_v8  ;;  %v2266_v12 = vadd.f32 %v3914_v31, %v6017_v60  ;;  %v6018_v36 = vld [vmem:[#allocation24_spill] sm:$0xff]  ;;  %v6023_v53 = vld [vmem:[#allocation37_spill] sm:$0xff]  ;;  %v6024_v31 = vld [vmem:[#allocation22_spill] sm:$0xff] }
 0x277   : > { %v2816_v24 = vpack.c.bf16 %v2802_v54, %v2801_v26  ;;  %v2800_v55 = vmax.f32 %v2784_v43, 0.0  ;;  %v2732_v1 = vadd.f32 %v2682_v48, %v2297_v44  ;;  %v2693_v30 = vadd.f32 %v4168_v58, %v3988_v28  ;;  %v6012_v28 = vld [vmem:[#allocation38_spill] sm:$0xff]  ;;  %v6019_v26 = vld [vmem:[#allocation17_spill] sm:$0xff]  ;;  %v4011_v56 = vpop.f32.mrf.mxu0 }
 0x278   : > { %v2684_v57 = vpop.f32.mrf.mxu1  ;;  %v2789_v20 = vadd.f32 %v5700_v11, %v2734_v62  ;;  %v4000_v5 = vadd.f32 %v6012_v28, %v6011_v59  ;;  %v2304_v15 = vadd.f32 %v2274_v52, %v6018_v36  ;;  %v2287_v54 = vadd.f32 %v6019_v26, %v3929_v61  ;;  %v6020_v44 = vld [vmem:[#allocation18_spill] sm:$0xff]  ;;  %v6029_v28 = vld [vmem:[#allocation20_spill] sm:$0xff] }
 0x279   : > { %v2685_v49 = vadd.f32 %v3982_v35, %v2684_v57  ;;  %v2815_v4 = vpack.c.bf16 %v2800_v55, %v2799_v42  ;;  %v2735_v50 = vadd.f32 %v2693_v30, %v2300_v7  ;;  %v2787_v35 = vadd.f32 %v5700_v11, %v2732_v1  ;;  %v6022_v7 = vld [vmem:[#allocation36_spill] sm:$0xff] }
 0x27a   : > { %v4171_v2 = vpop.f32.mrf.mxu1  ;;  %v2805_v43 = vmax.f32 %v2789_v20, 0.0  ;;  %v2279_v58 = vadd.f32 %v3923_v45, %v6020_v44  ;;  %v3926_v17 = vadd.f32 %v6023_v53, %v6022_v7  ;;  %v4009_v57 = vadd.f32 %v4008_v10, %v4007_v3  ;;  %v6028_v20 = vld [vmem:[#allocation19_spill] sm:$0xff]  ;;  %v5780_v53 = vld [vmem:[%s5898_s8] ss:$0 sm:$0xff] }
 0x27b   : > { %v2733_v37 = vadd.f32 %v2685_v49, %v2298_v22  ;;  %v2706_v9 = vadd.f32 %v4171_v2, %v3997_v0  ;;  %4193 = vmatprep.mubr.bf16.mxu0 %v2815_v4  ;;  %v2790_v47 = vadd.f32 %v5700_v11, %v2735_v50  ;;  %v6021_v22 = vld [vmem:[#allocation42_spill] sm:$0xff]  ;;  %v2803_v16 = vmax.f32 %v2787_v35, 0.0  ;;  %v6025_v49 = vld [vmem:[#allocation41_spill] sm:$0xff]  ;;  %v6026_v4 = vld [vmem:[#allocation43_spill] sm:$0xff] }
 0x27c   : > { %v2697_v46 = vpop.f32.mrf.mxu1  ;;  %4194 = vmatmul.mubr.bf16.vlgmr.msra.gmra.mxu0 %v2816_v24  ;;  %v3932_v42 = vadd.f32 %v6021_v22, %v5680_v25  ;;  %v2302_v23 = vadd.f32 %v2266_v12, %v6024_v31  ;;  %v4003_v38 = vadd.f32 %v6026_v4, %v6025_v49  ;;  %v2307_v32 = vadd.f32 %v2287_v54, %v6027_v39  ;;  %v6032_v54 = vld [vmem:[#allocation26_spill] sm:$0xff] }
 0x27d   : > { %v2788_v33 = vadd.f32 %v5700_v11, %v2733_v37  ;;  %v2698_v19 = vadd.f32 %v3991_v41, %v2697_v46  ;;  %v2806_v48 = vmax.f32 %v2790_v47, 0.0  ;;  %v2738_v0 = vadd.f32 %v2706_v9, %v2303_v34 }
 0x27e   : > { %v4172_v62 = vpop.f32.mrf.mxu1  ;;  %v2290_v50 = vadd.f32 %v6028_v20, %v3932_v42  ;;  %v4012_v10 = vadd.f32 %v4011_v56, %v4010_v40  ;;  %v2305_v14 = vadd.f32 %v2279_v58, %v6030_v6  ;;  %v6031_v40 = vld [vmem:[#allocation28_spill] sm:$0xff]  ;;  %v2994_v56 = vld [vmem:[%s4645_s18 + $0x18] sm:$0xff] }
 0x27f   : > { %v2804_v24 = vmax.f32 %v2788_v33, 0.0  ;;  %v2709_v55 = vadd.f32 %v4172_v62, %v4000_v5  ;;  %v2818_v41 = vpack.c.bf16 %v2806_v48, %v2805_v43  ;;  %v2736_v1 = vadd.f32 %v2698_v19, %v2301_v63  ;;  %v2998_v6 = vld [vmem:[%s4645_s18 + $0x38] sm:$0xff] }
 0x280   : > { %v2700_v30 = vpop.f32.mrf.mxu1  ;;  %v2793_v25 = vadd.f32 %v5700_v11, %v2738_v0  ;;  %v2282_v5 = vadd.f32 %v3926_v17, %v6029_v28  ;;  %v2308_v60 = vadd.f32 %v2290_v50, %v6031_v40 }
 0x281   : > { %v2739_v29 = vadd.f32 %v2709_v55, %v2304_v15  ;;  %v2701_v52 = vadd.f32 %v3994_v51, %v2700_v30  ;;  %v2817_v61 = vpack.c.bf16 %v2804_v24, %v2803_v16  ;;  %v2791_v51 = vadd.f32 %v5700_v11, %v2736_v1  ;;  %v2991_v30 = vld [vmem:[%s4645_s18] sm:$0xff] }
 0x282   : > { %v4175_v18 = vpop.f32.mrf.mxu1  ;;  %v2809_v34 = vmax.f32 %v2793_v25, 0.0  ;;  %v2306_v43 = vadd.f32 %v2282_v5, %v6032_v54  ;;  %v2995_v5 = vld [vmem:[%s4645_s18 + $0x20] sm:$0xff] }
 0x283   : > { %v2794_v2 = vadd.f32 %v5700_v11, %v2739_v29  ;;  %v2737_v59 = vadd.f32 %v2701_v52, %v2302_v23  ;;  %v2722_v3 = vadd.f32 %v4175_v18, %v4009_v57  ;;  %4197 = vmatprep.mubr.bf16.mxu1 %v2817_v61  ;;  %v2807_v33 = vmax.f32 %v2791_v51, 0.0  ;;  %v2992_v52 = vld [vmem:[%s4645_s18 + $0x8] sm:$0xff] }
 0x284   : > { %v2713_v45 = vpop.f32.mrf.mxu1  ;;  %4198 = vmatmul.mubr.bf16.vlgmr.msra.gmra.mxu1 %v2818_v41  ;;  %v2993_v41 = vld [vmem:[%s4645_s18 + $0x10] sm:$0xff] }
 0x285   : > { %v2810_v37 = vmax.f32 %v2794_v2, 0.0  ;;  %v2792_v9 = vadd.f32 %v5700_v11, %v2737_v59  ;;  %v2742_v35 = vadd.f32 %v2722_v3, %v2307_v32  ;;  %v2714_v47 = vadd.f32 %v4003_v38, %v2713_v45  ;;  %v2997_v59 = vld [vmem:[%s4645_s18 + $0x30] sm:$0xff] }
 0x286   : > { %v4176_v8 = vpop.f32.mrf.mxu1 }
 0x287   : > { %v2808_v63 = vmax.f32 %v2792_v9, 0.0  ;;  %v2740_v46 = vadd.f32 %v2714_v47, %v2305_v14  ;;  %v2725_v12 = vadd.f32 %v4176_v8, %v4012_v10  ;;  %v2820_v36 = vpack.c.bf16 %v2810_v37, %v2809_v34  ;;  %v2996_v9 = vld [vmem:[%s4645_s18 + $0x28] sm:$0xff] }
 0x288   : > { %v2716_v19 = vpop.f32.mrf.mxu1  ;;  %v2797_v15 = vadd.f32 %v5700_v11, %v2742_v35 }
 0x289   : > { %v2743_v26 = vadd.f32 %v2725_v12, %v2308_v60  ;;  %v2717_v48 = vadd.f32 %v4006_v27, %v2716_v19  ;;  %v2819_v0 = vpack.c.bf16 %v2808_v63, %v2807_v33  ;;  %v2795_v62 = vadd.f32 %v5700_v11, %v2740_v46  ;;  %v3001_v60 = vld [vmem:[%s4645_s18 + $0x50] sm:$0xff] }
 0x28a   : > { %v2813_v44 = vmax.f32 %v2797_v15, 0.0 }
 0x28b   : > { %v2798_v21 = vadd.f32 %v5700_v11, %v2743_v26  ;;  %v2741_v13 = vadd.f32 %v2717_v48, %v2306_v43  ;;  %4201 = vmatprep.mubr.bf16.mxu1 %v2819_v0  ;;  %v2811_v42 = vmax.f32 %v2795_v62, 0.0  ;;  %v2999_v26 = vld [vmem:[%s4645_s18 + $0x40] sm:$0xff]  ;;  %v3002_v43 = vld [vmem:[%s4645_s18 + $0x58] sm:$0xff] }
 0x28c   : > { %4202 = vmatmul.mubr.bf16.gmra.mxu1 %v2820_v36 }
 0x28d   : > { %v2814_v58 = vmax.f32 %v2798_v21, 0.0  ;;  %v2796_v22 = vadd.f32 %v5700_v11, %v2741_v13  ;;  %v3000_v13 = vld [vmem:[%s4645_s18 + $0x48] sm:$0xff] }
 0x28f   : > { %v2812_v24 = vmax.f32 %v2796_v22, 0.0  ;;  %v2822_v55 = vpack.c.bf16 %v2814_v58, %v2813_v44 }
 0x291   : > { %v2821_v7 = vpack.c.bf16 %v2812_v24, %v2811_v42 }
 0x293   : > { %4205 = vmatprep.mubr.bf16.mxu1 %v2821_v7 }
 0x294   : > { %4206 = vmatmul.mubr.bf16.gmra.mxu1 %v2822_v55 }
 0x33c   : > { %v4195_v17 = vpop.f32.mrf.mxu0 }
 0x33d   : > { %v2937_v16 = vadd.f32 %v4195_v17, %v5780_v53 }
 0x33e   : > { %v2928_v11 = vpop.f32.mrf.mxu0 }
 0x33f   : > { %v2929_v1 = vadd.f32 %v5780_v53, %v2928_v11  ;;  %v3009_v29 = vadd.f32 %v2993_v41, %v2937_v16  ;;  %v3005_v16 = vld [vmem:[%s4645_s18 + $0x70] sm:$0xff] }
 0x340   : > { %v4196_v57 = vpop.f32.mrf.mxu0 }
 0x341   : > { %v2940_v31 = vadd.f32 %v4196_v57, %v5780_v53  ;;  %v3007_v49 = vadd.f32 %v2991_v30, %v2929_v1  ;;  %v3025_v25 = vmax.f32 %v3009_v29, 0.0 }
 0x342   : > { %v2931_v23 = vpop.f32.mrf.mxu0 }
 0x343   : > { %v3010_v4 = vadd.f32 %v2994_v56, %v2940_v31  ;;  %v2932_v38 = vadd.f32 %v5780_v53, %v2931_v23  ;;  %v3023_v20 = vmax.f32 %v3007_v49, 0.0  ;;  %v3003_v56 = vld [vmem:[%s4645_s18 + $0x60] sm:$0xff]  ;;  %v3006_v31 = vld [vmem:[%s4645_s18 + $0x78] sm:$0xff] }
 0x344   : > { %v4199_v18 = vpop.f32.mrf.mxu1 }
 0x345   : > { %v3026_v39 = vmax.f32 %v3010_v4, 0.0  ;;  %v3008_v32 = vadd.f32 %v2992_v52, %v2932_v38  ;;  %v2953_v61 = vadd.f32 %v4199_v18, %v5780_v53  ;;  %v3004_v38 = vld [vmem:[%s4645_s18 + $0x68] sm:$0xff]  ;;  %s5839_s18 = scalar_lea.sflag [#allocation4], %s440_s26 }
 0x346   : > { %v2944_v3 = vpop.f32.mrf.mxu1 }
 0x347   : > { %v3712_v50 = vpack.c.bf16 %v3026_v39, %v3025_v25  ;;  %v3024_v2 = vmax.f32 %v3008_v32, 0.0  ;;  %v2945_v10 = vadd.f32 %v5780_v53, %v2944_v3  ;;  %v3013_v14 = vadd.f32 %v2997_v59, %v2953_v61 }
 0x348   : > { %v4200_v51 = vpop.f32.mrf.mxu1 }
 0x349   : > { %3748 = vst [vmem:[%s5796_s14 + $0x8] sm:$0xff] %v3712_v50   ;;  %v3707_v28 = vpack.c.bf16 %v3024_v2, %v3023_v20  ;;  %v2956_v45 = vadd.f32 %v4200_v51, %v5780_v53  ;;  %v3011_v35 = vadd.f32 %v2995_v5, %v2945_v10  ;;  %v3029_v8 = vmax.f32 %v3013_v14, 0.0 }
 0x34a   : > { %v2947_v37 = vpop.f32.mrf.mxu1 }
 0x34b   : > { %3708 = vst [vmem:[%s5796_s14] sm:$0xff] %v3707_v28   ;;  %v3014_v47 = vadd.f32 %v2998_v6, %v2956_v45  ;;  %v2948_v27 = vadd.f32 %v5780_v53, %v2947_v37  ;;  %v3027_v33 = vmax.f32 %v3011_v35, 0.0 }
 0x34c   : > { %v4203_v34 = vpop.f32.mrf.mxu1 }
 0x34d   : > { %v3030_v63 = vmax.f32 %v3014_v47, 0.0  ;;  %v3012_v46 = vadd.f32 %v2996_v9, %v2948_v27  ;;  %v2969_v40 = vadd.f32 %v4203_v34, %v5780_v53 }
 0x34e   : > { %v2960_v12 = vpop.f32.mrf.mxu1 }
 0x34f   : > { %v3722_v19 = vpack.c.bf16 %v3030_v63, %v3029_v8  ;;  %v3028_v36 = vmax.f32 %v3012_v46, 0.0  ;;  %v2961_v15 = vadd.f32 %v5780_v53, %v2960_v12  ;;  %v3017_v0 = vadd.f32 %v3001_v60, %v2969_v40 }
 0x350   : > { %v4204_v54 = vpop.f32.mrf.mxu1 }
 0x351   : > { %3750 = vst [vmem:[%s5796_s14 + $0x18] sm:$0xff] %v3722_v19   ;;  %v3717_v48 = vpack.c.bf16 %v3028_v36, %v3027_v33  ;;  %v2972_v62 = vadd.f32 %v4204_v54, %v5780_v53  ;;  %v3015_v44 = vadd.f32 %v2999_v26, %v2961_v15  ;;  %v3033_v24 = vmax.f32 %v3017_v0, 0.0 }
 0x352   : > { %v2963_v21 = vpop.f32.mrf.mxu1 }
 0x353   : > { %3749 = vst [vmem:[%s5796_s14 + $0x10] sm:$0xff] %v3717_v48   ;;  %v3018_v58 = vadd.f32 %v3002_v43, %v2972_v62  ;;  %v2964_v22 = vadd.f32 %v5780_v53, %v2963_v21  ;;  %v3031_v11 = vmax.f32 %v3015_v44, 0.0 }
 0x354   : > { %v4207_v42 = vpop.f32.mrf.mxu1 }
 0x355   : > { %v3034_v55 = vmax.f32 %v3018_v58, 0.0  ;;  %v3016_v7 = vadd.f32 %v3000_v13, %v2964_v22  ;;  %v2985_v17 = vadd.f32 %v4207_v42, %v5780_v53 }
 0x356   : > { %v2976_v41 = vpop.f32.mrf.mxu1 }
 0x357   : > { %v3732_v1 = vpack.c.bf16 %v3034_v55, %v3033_v24  ;;  %v3032_v30 = vmax.f32 %v3016_v7, 0.0  ;;  %v2977_v57 = vadd.f32 %v5780_v53, %v2976_v41  ;;  %v3021_v52 = vadd.f32 %v3005_v16, %v2985_v17 }
 0x358   : > { %v4208_v29 = vpop.f32.mrf.mxu1 }
 0x359   : > { %3752 = vst [vmem:[%s5796_s14 + $0x28] sm:$0xff] %v3732_v1   ;;  %v3727_v23 = vpack.c.bf16 %v3032_v30, %v3031_v11  ;;  %v2988_v49 = vadd.f32 %v4208_v29, %v5780_v53  ;;  %v3019_v25 = vadd.f32 %v3003_v56, %v2977_v57  ;;  %v3037_v18 = vmax.f32 %v3021_v52, 0.0 }
 0x35a   : > { %v2979_v4 = vpop.f32.mrf.mxu1 }
 0x35b   : > { %3751 = vst [vmem:[%s5796_s14 + $0x20] sm:$0xff] %v3727_v23   ;;  %v3022_v39 = vadd.f32 %v3006_v31, %v2988_v49  ;;  %v2980_v32 = vadd.f32 %v5780_v53, %v2979_v4  ;;  %v3035_v50 = vmax.f32 %v3019_v25, 0.0 }
 0x35d   : > { %v3038_v61 = vmax.f32 %v3022_v39, 0.0  ;;  %v3020_v20 = vadd.f32 %v3004_v38, %v2980_v32 }
 0x35f   : > { %v3742_v2 = vpack.c.bf16 %v3038_v61, %v3037_v18  ;;  %v3036_v59 = vmax.f32 %v3020_v20, 0.0 }
 0x361   : > { %3754 = vst [vmem:[%s5796_s14 + $0x38] sm:$0xff] %v3742_v2   ;;  %v3737_v3 = vpack.c.bf16 %v3036_v59, %v3035_v50 }
 0x363   : > { %3753 = vst [vmem:[%s5796_s14 + $0x30] sm:$0xff] %v3737_v3  }
 0x364   : > { %4400 = shalt.err (!%p4397_p0)
}
 0x365   : > { %s4401_s24 = scalar_lea.hbm %s5831_s15, 1024  ;;  %s4405_s26 = scalar_lea.hbm %s5899_s9, 4096 }
 0x366   : > { %p4402_p1 = scmp.ne.s32.totalorder %s5831_s15, %s4401_s24  ;;  %p4406_p5 = scmp.lt.s32.totalorder %s5831_s15, %s5899_s9 }
 0x367   : > { %p4407_p6 = scmp.lt.s32.totalorder %s4405_s26, %s4401_s24 }
 0x368   : > { %p4403_p2 = pnand %p4402_p1, %p4586_p3 }
 0x369   : > { %p4408_p7 = por %p4407_p6, %p4406_p5 }
 0x36a   : > { %p4404_p4 = pneg %p4403_p2 }
 0x36c   : > { %p4409_p9 = pnand %p4408_p7, %p4404_p4 }
 0x36e   : > { %4412 = shalt.err (!%p4409_p9)
}
 0x36f   : > { %s4483_s23 = smov 64   ;;  %s4484_s30 = smov 4  }
 0x370   : > { %4225 = dma.vmem_to_hbm [thread:$0]  (%p4586_p3), %s5834_s17, 1024, %s5831_s15, %s5839_s18, %s4483_s23, %s4483_s23, %s4484_s30  }
 0x371 PF: > { %s6033_s13 = sld [smem:[#allocation6_spill]]  ;;  %p4231_p10 = scmp.ge.s32.totalorder %s4479_s16, 2 }
 0x373   : > { %p4228_p11 = pnand %p4231_p10, %p4595_p8 }
 0x375   : > { %p4229_p12 = pneg %p4228_p11 }
 0x377   : > { %s3150_s29 = sand.u32 1, %s6033_s13  }
 0x378   : > { %s3151_s25 = scalar_lea.sflag [#allocation4], %s3150_s29 }
 0x379   : > { %4446 = dma.done.wait (%p4229_p12), %s3151_s25, 1024  }
 0x37a   : > { %4448 = vsyncadd (%p4229_p12), %s3151_s25, 4294966272  ;;  %s22_s16 = sadd.s32 1, %s4479_s16   ;;  %s6035_s19 = sld [smem:[#allocation7_spill]] }
 0x37b   : > { %p19_p13 = scmp.ge.s32.totalorder %s22_s16, 6   ;;  %s6036_s11 = sld [smem:[#allocation13_spill]] }
 0x37c   : > { %s6037_s12 = sld [smem:[#allocation8_spill]]  ;;  %s6041_s30 = smov %s4455_s10 }
 0x37d   : > { %s6038_s13 = sld [smem:[#allocation9_spill]]  ;;  %21 = sbr.rel (!%p19_p13) target bundleno = 5 (0x5), region = 99 }
 0x37e   : > { %s6039_s14 = sld [smem:[#allocation10_spill]] }
 0x37f   : > { %s6040_s15 = sld [smem:[#allocation11_spill]] }
 0x380   : > { %s6042_s10 = smov %s6035_s19 }
 0x382   :  { %3156 = vsyncpa [#allocation4], 1 }
 0x383   :  { %3158 = vsyncpa [#allocation4 + $0x1], 1 }

</bundles_post_ra>
